<compile_context>
chip_gen: v5e
topology: v5e:2x2
jax: 0.10.0
libtpu: 0.0.40
codegen_flags: <defaults>
</compile_context>

<pallas_src>
import functools
import math

import jax
import jax.numpy as jnp
from jax import lax
from jax.experimental import pallas as pl
from jax.experimental.pallas import tpu as pltpu

# edge e connects source node-type _EDGE_INDEX[e][0] to dest _EDGE_INDEX[e][1]
_EDGE_INDEX = ((0, 1), (1, 0), (0, 2), (2, 0), (1, 2), (2, 1))
# node-type -> the two edges (src == node-type) whose messages new_fac() sums
_NODE_EDGES = ((0, 2), (1, 4), (3, 5))

_NEG_INF = -1e30


def _leaky(x):  # LeakyReLU(negative_slope=0.2), as in the PyTorch module
    return jnp.where(x > 0, x, 0.2 * x)


def _factor_normalize(x, pool, expand):
    # F.normalize(p=2, dim=2) applied per factor on the flat (N, K*Dk) layout
    ss = jnp.dot(x * x, pool, preferred_element_type=jnp.float32)     # (N, K)
    inv = lax.rsqrt(jnp.maximum(ss, 1e-24))
    return x * jnp.dot(inv, expand, preferred_element_type=jnp.float32)


# ---------------------------------------------------------------------------
# Kernel 1: fac() projection (one shot)
# ---------------------------------------------------------------------------
def _fac_kernel(emb_ref, wfac_ref, adstT_ref, exp_ref, pool_ref,
                ego_ref, ego_bf_ref, sdst_ref):
    expand = exp_ref[...]
    pool = pool_ref[...]
    egos = []
    for nt in range(3):
        x = jnp.dot(emb_ref[nt], wfac_ref[nt],
                    preferred_element_type=jnp.float32)       # (n_pad, K*Dk)
        x = _factor_normalize(_leaky(x), pool, expand)
        egos.append(x)
        ego_ref[nt] = x
        ego_bf_ref[nt] = x.astype(jnp.bfloat16)
    for e, (_, dst_t) in enumerate(_EDGE_INDEX):
        # (K, K*Dk) . (n_pad, K*Dk)^T -> (K, n_pad): dst-side attention scores
        sdst_ref[e] = lax.dot_general(
            adstT_ref[e], egos[dst_t], (((1,), (1,)), ((), ())),
            preferred_element_type=jnp.float32)


# ---------------------------------------------------------------------------
# Kernel 2: the message-passing iterations, one source-row tile per grid step
# ---------------------------------------------------------------------------
def _iter_kernel(ego_t_ref, ego_bf_ref, sdst_ref, mask_ref, asrc_ref, q_ref,
                 wbd_ref, exp_ref, pool_ref, out_ref, *, factor_k, iterate):
    k_fac = factor_k
    n_edges, tr, n_pad = mask_ref.shape

    expand = exp_ref[...]
    pool = pool_ref[...]
    wbd = wbd_ref[...]

    # fixed across iterations -----------------------------------------------
    ego_tiles = [ego_t_ref[t] for t in range(3)]            # (tr, K*Dk) f32
    # per-row "has at least one edge" -> zeroes empty softmax rows (computed
    # once per call, not per iteration)
    row_has = [
        (jnp.max(mask_ref[e].astype(jnp.float32), axis=1, keepdims=True) > 0
         ).astype(jnp.float32)
        for e in range(n_edges)
    ]

    def one_iteration(_, carry):
        cur = carry[:3]                                     # (tr, K*Dk) / type
        r_prev = carry[3:]                                  # (tr, K) / edge
        new_cur = [None] * 3
        new_r = [None] * n_edges
        for nt in range(3):
            edges = _NODE_EDGES[nt]
            # batched src-side attention projection for both edges of this type
            s_all = jnp.dot(cur[nt], asrc_ref[nt],
                            preferred_element_type=jnp.float32)     # (tr, 2K)
            x_acc = ego_tiles[nt]
            for slot, e in enumerate(edges):
                dst_t = _EDGE_INDEX[e][1]
                s_src = s_all[:, slot * k_fac:(slot + 1) * k_fac]   # (tr, K)
                rp = r_prev[e]                                      # (tr, K)
                sdst = sdst_ref[e]                                  # (K, n_pad)

                # lane-dense per-factor logits: no (tr, n_pad, K) intermediate
                e_rela = jnp.zeros((tr, n_pad), jnp.float32)
                for k in range(k_fac):
                    att = jnp.maximum(s_src[:, k:k + 1] + sdst[k:k + 1, :], 0.0)
                    e_rela = e_rela + rp[:, k:k + 1] * att

                # masked row softmax over existing edges
                # (== torch.sparse.softmax; bias derived in-kernel from the
                #  bf16 mask, empty rows zeroed via row_has)
                m_f = mask_ref[e].astype(jnp.float32)               # (tr, n_pad)
                logits = jnp.where(m_f > 0, e_rela, _NEG_INF)
                mx = jnp.max(logits, axis=1, keepdims=True)
                ex = jnp.exp(logits - mx)
                denom = jnp.sum(ex, axis=1, keepdims=True)
                scale = row_has[e] * pl.reciprocal(
                    jnp.maximum(denom, 1e-30), approx=True)
                adj = (ex * scale).astype(jnp.bfloat16)

                # aggregation (bf16 MXU inputs, f32 accumulation), LeakyReLU, W
                zagg = jnp.dot(adj, ego_bf_ref[dst_t],
                               preferred_element_type=jnp.float32)  # (tr, K*Dk)
                z = jnp.dot(_leaky(zagg), wbd,
                            preferred_element_type=jnp.float32)

                # factor attention r = softmax_k(tanh(z) @ q)
                nr = jnp.dot(jnp.tanh(z), q_ref[e],
                             preferred_element_type=jnp.float32)    # (tr, K)
                er = jnp.exp(nr - jnp.max(nr, axis=1, keepdims=True))
                rn = er * pl.reciprocal(jnp.sum(er, axis=1, keepdims=True),
                                        approx=True)
                new_r[e] = rn

                # new_fac accumulation folded into the edge loop
                rexp = jnp.dot(rn, expand, preferred_element_type=jnp.float32)
                x_acc = x_acc + z * rexp
            new_cur[nt] = _factor_normalize(x_acc, pool, expand)
        return tuple(new_cur) + tuple(new_r)

    init = tuple(ego_tiles) + tuple(
        jnp.full((tr, k_fac), 1.0 / k_fac, jnp.float32)
        for _ in range(n_edges))
    final = lax.fori_loop(0, iterate, one_iteration, init)
    for nt in range(3):
        out_ref[nt] = final[nt]


# ---------------------------------------------------------------------------
# Wrapper: parameter repacking + the two pallas_calls
# ---------------------------------------------------------------------------
def _round_up(x, m):
    return ((x + m - 1) // m) * m


def layer_forward(params, edge_list, shape_list, u_emb, i_emb, t_emb,
                  factor_k, iterate, row_tile=64):
    del shape_list  # edges are padded into a common (n_pad, n_pad) square
    Wtk, at, W, q_rela = (params["Wtk"], params["at"],
                          params["W"], params["q_rela"])
    K = factor_k
    Dk = W.shape[0]
    KDk = K * Dk
    Din = u_emb.shape[1]
    sizes = (u_emb.shape[0], i_emb.shape[0], t_emb.shape[0])
    n_edges = len(edge_list)
    assert n_edges == 6

    # dst/lane axis padded to a multiple of 128 (lane-dense softmax/matmuls);
    # row_tile must be a multiple of 16 (bf16 sublane packing) and divide n_pad
    assert row_tile % 16 == 0
    n_pad = _round_up(max(sizes), math.lcm(128, row_tile))
    n_tiles = n_pad // row_tile

    # ---- parameter / constant repacking (factor-major flat layout) ---------
    emb_in = jnp.zeros((3, n_pad, Din), jnp.float32)
    for t_i, emb in enumerate((u_emb, i_emb, t_emb)):
        emb_in = emb_in.at[t_i, :emb.shape[0], :].set(emb.astype(jnp.float32))

    Wfac = jnp.transpose(Wtk.astype(jnp.float32), (0, 2, 1, 3)).reshape(3, Din, KDk)
    eyeK = jnp.eye(K, dtype=jnp.float32)

    # src half of `at`: per-edge (K*Dk, K) selector, packed per source type
    A_src = jnp.einsum("ekd,kl->ekdl", at[:, :, :Dk].astype(jnp.float32),
                       eyeK).reshape(n_edges, KDk, K)
    A_src_pack = jnp.stack(
        [jnp.concatenate([A_src[ea], A_src[eb]], axis=1)
         for (ea, eb) in _NODE_EDGES])                        # (3, K*Dk, 2K)
    # dst half of `at`: (K, K*Dk) so s_dst^T comes out (K, n_pad) in fac()
    A_dst_T = jnp.einsum("ekd,kl->ekld", at[:, :, Dk:].astype(jnp.float32),
                         eyeK).reshape(n_edges, K, KDk)
    Q = jnp.einsum("ed,kl->ekdl", q_rela.astype(jnp.float32),
                   eyeK).reshape(n_edges, KDk, K)
    Wbd = jnp.kron(eyeK, W.astype(jnp.float32))               # block-diag W
    expand = jnp.repeat(eyeK, Dk, axis=1)                     # (K, K*Dk)
    pool = expand.T                                           # (K*Dk, K)

    # dense 0/1 adjacency mask in bf16, built once
    # TODO(synk): duplicate edges are merged here; torch.sparse.softmax keeps
    #             duplicates as separate entries (unique-edge graphs assumed).
    # TODO(synk): for very large graphs, additionally tile the dst axis with an
    #             online softmax (and row-tile the fac kernel) instead of
    #             keeping (row_tile, n_pad) mask slabs resident.
    masks = jnp.zeros((n_edges, n_pad, n_pad), jnp.bfloat16)
    for e, (u_idx, i_idx) in enumerate(edge_list):
        masks = masks.at[e, u_idx, i_idx].set(1.0)

    def const_spec(shape):                # full-array block, grid-invariant
        nd = len(shape)
        return pl.BlockSpec(shape, lambda j, _nd=nd: (0,) * _nd)

    # ---- call 1: fac() projection ------------------------------------------
    ego, ego_bf, sdstT = pl.pallas_call(
        _fac_kernel,
        out_shape=(jax.ShapeDtypeStruct((3, n_pad, KDk), jnp.float32),
                   jax.ShapeDtypeStruct((3, n_pad, KDk), jnp.bfloat16),
                   jax.ShapeDtypeStruct((n_edges, K, n_pad), jnp.float32)),
        grid=(1,),
        in_specs=[const_spec(emb_in.shape), const_spec(Wfac.shape),
                  const_spec(A_dst_T.shape), const_spec(expand.shape),
                  const_spec(pool.shape)],
        out_specs=(const_spec((3, n_pad, KDk)), const_spec((3, n_pad, KDk)),
                   const_spec((n_edges, K, n_pad))),
        compiler_params=pltpu.CompilerParams(
            dimension_semantics=("arbitrary",)),
    )(emb_in, Wfac, A_dst_T, expand, pool)

    # ---- call 2: iterations, tiled over source rows -------------------------
    def nbytes(shape, dt):
        return math.prod(shape) * jnp.dtype(dt).itemsize

    resident = (2 * nbytes((3, row_tile, KDk), jnp.float32)          # ego tile
                + 2 * nbytes((3, n_pad, KDk), jnp.bfloat16)          # ego bf16
                + 2 * nbytes((n_edges, K, n_pad), jnp.float32)       # s_dst^T
                + 2 * nbytes((n_edges, row_tile, n_pad), jnp.bfloat16)  # masks
                + 2 * nbytes((3, row_tile, KDk), jnp.float32)        # out tile
                + 12 * nbytes((row_tile, n_pad), jnp.float32))       # temps
    vmem_limit = int(min(64 * 1024 * 1024,
                         max(16 * 1024 * 1024, 2 * resident)))

    kernel = functools.partial(_iter_kernel, factor_k=K, iterate=iterate)
    out = pl.pallas_call(
        kernel,
        out_shape=jax.ShapeDtypeStruct((3, n_pad, KDk), jnp.float32),
        grid=(n_tiles,),
        in_specs=[
            pl.BlockSpec((3, row_tile, KDk), lambda j: (0, j, 0)),    # ego tile
            const_spec((3, n_pad, KDk)),                              # ego bf16
            const_spec((n_edges, K, n_pad)),                          # s_dst^T
            pl.BlockSpec((n_edges, row_tile, n_pad), lambda j: (0, j, 0)),
            const_spec(A_src_pack.shape), const_spec(Q.shape),
            const_spec(Wbd.shape), const_spec(expand.shape),
            const_spec(pool.shape),
        ],
        out_specs=pl.BlockSpec((3, row_tile, KDk), lambda j: (0, j, 0)),
        compiler_params=pltpu.CompilerParams(
            dimension_semantics=("parallel",),
            vmem_limit_bytes=vmem_limit),
    )(ego, ego_bf, sdstT, masks, A_src_pack, Q, Wbd, expand, pool)

    # layout already equals torch.cat(list(e), dim=1): (N, K*Dk), factor-major
    return [out[0, :sizes[0], :], out[1, :sizes[1], :], out[2, :sizes[2], :]]


# ---------------------------------------------------------------------------
# Main
# ---------------------------------------------------------------------------
if __name__ == "__main__":
    key = jax.random.PRNGKey(0)
    factor_k, dim_in, dim_out, rela_k, iterate = 4, 16, 32, 6, 2
    dim_k = dim_out // factor_k                     # 8
    N_u, N_i, N_t = 8, 12, 6
    sizes = [N_u, N_i, N_t]
    index = [[0, 1], [1, 0], [0, 2], [2, 0], [1, 2], [2, 1]]

    keys = jax.random.split(key, 16)

    # deterministic parameter init (module __init__ leaves them uninitialized)
    params = dict(
        Wtk=0.1 * jax.random.normal(keys[0], (3, factor_k, dim_in, dim_k),
                                    jnp.float32),
        at=0.1 * jax.random.normal(keys[1], (rela_k, factor_k, 2 * dim_k),
                                   jnp.float32),
        W=0.1 * jax.random.normal(keys[2], (dim_k, dim_k), jnp.float32),
        q_rela=0.1 * jax.random.normal(keys[3], (rela_k, dim_k), jnp.float32),
    )

    u_emb = jax.random.normal(keys[4], (N_u, dim_in), jnp.float32)
    i_emb = jax.random.normal(keys[5], (N_i, dim_in), jnp.float32)
    t_emb = jax.random.normal(keys[6], (N_t, dim_in), jnp.float32)

    # build 6 edge types with unique (src, dst) pairs
    edge_list, shape_list = [], []
    for e in range(6):
        Ns, Nd = sizes[index[e][0]], sizes[index[e][1]]
        E = min(Ns * Nd, 2 * max(Ns, Nd))
        perm = jax.random.permutation(keys[7 + e], Ns * Nd)[:E]
        u_idx = (perm // Nd).astype(jnp.int32)
        i_idx = (perm % Nd).astype(jnp.int32)
        edge_list.append((u_idx, i_idx))
        shape_list.append((Ns, Nd))

    outs = layer_forward(params, edge_list, shape_list,
                         u_emb, i_emb, t_emb, factor_k, iterate)
    outs = jax.block_until_ready(outs)

    assert outs[0].shape == (N_u, dim_out)
    assert outs[1].shape == (N_i, dim_out)
    assert outs[2].shape == (N_t, dim_out)
    assert all(bool(jnp.all(jnp.isfinite(o))) for o in outs)
    print("KERNEL_OK")
</pallas_src>

<mosaic_0001>
module attributes {stable_mosaic.version = 11 : i64} {
  func.func @_fac_kernel(%arg0: i32, %arg1: memref<3x128x16xf32, #tpu.memory_space<vmem>>, %arg2: memref<3x16x32xf32, #tpu.memory_space<vmem>>, %arg3: memref<6x4x32xf32, #tpu.memory_space<vmem>>, %arg4: memref<4x32xf32, #tpu.memory_space<vmem>>, %arg5: memref<32x4xf32, #tpu.memory_space<vmem>>, %arg6: memref<3x128x32xf32, #tpu.memory_space<vmem>>, %arg7: memref<3x128x32xbf16, #tpu.memory_space<vmem>>, %arg8: memref<6x4x128xf32, #tpu.memory_space<vmem>>) attributes {dimension_semantics = [#tpu.dimension_semantics<arbitrary>], iteration_bounds = array<i64: 1>, scalar_prefetch = 0 : i64, scratch_operands = 0 : i64, tpu.core_type = #tpu.core_type<tc>, window_params = [{pipeline_mode = #tpu.pipeline_mode<synchronous>, transform_indices = @transform_0, window_bounds = array<i64: 3, 128, 16>}, {pipeline_mode = #tpu.pipeline_mode<synchronous>, transform_indices = @transform_1, window_bounds = array<i64: 3, 16, 32>}, {pipeline_mode = #tpu.pipeline_mode<synchronous>, transform_indices = @transform_2, window_bounds = array<i64: 6, 4, 32>}, {pipeline_mode = #tpu.pipeline_mode<synchronous>, transform_indices = @transform_3, window_bounds = array<i64: 4, 32>}, {pipeline_mode = #tpu.pipeline_mode<synchronous>, transform_indices = @transform_4, window_bounds = array<i64: 32, 4>}, {pipeline_mode = #tpu.pipeline_mode<synchronous>, transform_indices = @transform_5, window_bounds = array<i64: 3, 128, 32>}, {pipeline_mode = #tpu.pipeline_mode<synchronous>, transform_indices = @transform_6, window_bounds = array<i64: 3, 128, 32>}, {pipeline_mode = #tpu.pipeline_mode<synchronous>, transform_indices = @transform_7, window_bounds = array<i64: 6, 4, 128>}]} {
    %c0 = arith.constant 0 : index
    %c0_0 = arith.constant 0 : index
    %0 = vector.load %arg4[%c0, %c0_0] : memref<4x32xf32, #tpu.memory_space<vmem>>, vector<4x32xf32>
    %c0_1 = arith.constant 0 : index
    %c0_2 = arith.constant 0 : index
    %1 = vector.load %arg5[%c0_1, %c0_2] : memref<32x4xf32, #tpu.memory_space<vmem>>, vector<32x4xf32>
    %c0_3 = arith.constant 0 : index
    %c0_4 = arith.constant 0 : index
    %c0_5 = arith.constant 0 : index
    %2 = vector.load %arg1[%c0_3, %c0_4, %c0_5] : memref<3x128x16xf32, #tpu.memory_space<vmem>>, vector<1x128x16xf32>
    %3 = vector.shape_cast %2 : vector<1x128x16xf32> to vector<128x16xf32>
    %c0_6 = arith.constant 0 : index
    %c0_7 = arith.constant 0 : index
    %c0_8 = arith.constant 0 : index
    %4 = vector.load %arg2[%c0_6, %c0_7, %c0_8] : memref<3x16x32xf32, #tpu.memory_space<vmem>>, vector<1x16x32xf32>
    %5 = vector.shape_cast %4 : vector<1x16x32xf32> to vector<16x32xf32>
    %cst = arith.constant dense<0.000000e+00> : vector<128x32xf32>
    %6 = tpu.matmul %3, %5, %cst {dimension_numbers = #tpu.dot_dimension_numbers<[1], [0], [0], [1], [0, 0, 1, 1], [], []>} : vector<128x16xf32>, vector<16x32xf32>, vector<128x32xf32> -> vector<128x32xf32>
    %cst_9 = arith.constant 0.000000e+00 : f32
    %7 = vector.broadcast %cst_9 : f32 to vector<128x32xf32>
    %8 = arith.cmpf ogt, %6, %7 : vector<128x32xf32>
    %cst_10 = arith.constant 2.000000e-01 : f32
    %9 = vector.broadcast %cst_10 : f32 to vector<128x32xf32>
    %10 = arith.mulf %9, %6 : vector<128x32xf32>
    %11 = arith.select %8, %6, %10 : vector<128x32xi1>, vector<128x32xf32>
    %12 = arith.mulf %11, %11 : vector<128x32xf32>
    %cst_11 = arith.constant dense<0.000000e+00> : vector<128x4xf32>
    %13 = tpu.matmul %12, %1, %cst_11 {dimension_numbers = #tpu.dot_dimension_numbers<[1], [0], [0], [1], [0, 0, 1, 1], [], []>} : vector<128x32xf32>, vector<32x4xf32>, vector<128x4xf32> -> vector<128x4xf32>
    %cst_12 = arith.constant 1.000000e-24 : f32
    %14 = vector.broadcast %cst_12 : f32 to vector<128x4xf32>
    %15 = arith.maximumf %13, %14 : vector<128x4xf32>
    %16 = math.rsqrt %15 : vector<128x4xf32>
    %cst_13 = arith.constant dense<0.000000e+00> : vector<128x32xf32>
    %17 = tpu.matmul %16, %0, %cst_13 {dimension_numbers = #tpu.dot_dimension_numbers<[1], [0], [0], [1], [0, 0, 1, 1], [], []>} : vector<128x4xf32>, vector<4x32xf32>, vector<128x32xf32> -> vector<128x32xf32>
    %18 = arith.mulf %11, %17 : vector<128x32xf32>
    %c0_14 = arith.constant 0 : index
    %c0_15 = arith.constant 0 : index
    %c0_16 = arith.constant 0 : index
    %19 = vector.load %arg6[%c0_14, %c0_15, %c0_16] : memref<3x128x32xf32, #tpu.memory_space<vmem>>, vector<1x128x32xf32>
    %20 = vector.shape_cast %19 : vector<1x128x32xf32> to vector<128x32xf32>
    %21 = vector.shape_cast %18 : vector<128x32xf32> to vector<1x128x32xf32>
    tpu.vector_store %arg6[%c0_14, %c0_15, %c0_16], %21 {strides = array<i32>} : memref<3x128x32xf32, #tpu.memory_space<vmem>>, vector<1x128x32xf32>,
    %22 = arith.truncf %18 : vector<128x32xf32> to vector<128x32xbf16>
    %c0_17 = arith.constant 0 : index
    %c0_18 = arith.constant 0 : index
    %c0_19 = arith.constant 0 : index
    %23 = vector.load %arg7[%c0_17, %c0_18, %c0_19] : memref<3x128x32xbf16, #tpu.memory_space<vmem>>, vector<1x128x32xbf16>
    %24 = vector.shape_cast %23 : vector<1x128x32xbf16> to vector<128x32xbf16>
    %25 = vector.shape_cast %22 : vector<128x32xbf16> to vector<1x128x32xbf16>
    tpu.vector_store %arg7[%c0_17, %c0_18, %c0_19], %25 {strides = array<i32>} : memref<3x128x32xbf16, #tpu.memory_space<vmem>>, vector<1x128x32xbf16>,
    %c1 = arith.constant 1 : index
    %c0_20 = arith.constant 0 : index
    %c0_21 = arith.constant 0 : index
    %26 = vector.load %arg1[%c1, %c0_20, %c0_21] : memref<3x128x16xf32, #tpu.memory_space<vmem>>, vector<1x128x16xf32>
    %27 = vector.shape_cast %26 : vector<1x128x16xf32> to vector<128x16xf32>
    %c1_22 = arith.constant 1 : index
    %c0_23 = arith.constant 0 : index
    %c0_24 = arith.constant 0 : index
    %28 = vector.load %arg2[%c1_22, %c0_23, %c0_24] : memref<3x16x32xf32, #tpu.memory_space<vmem>>, vector<1x16x32xf32>
    %29 = vector.shape_cast %28 : vector<1x16x32xf32> to vector<16x32xf32>
    %cst_25 = arith.constant dense<0.000000e+00> : vector<128x32xf32>
    %30 = tpu.matmul %27, %29, %cst_25 {dimension_numbers = #tpu.dot_dimension_numbers<[1], [0], [0], [1], [0, 0, 1, 1], [], []>} : vector<128x16xf32>, vector<16x32xf32>, vector<128x32xf32> -> vector<128x32xf32>
    %cst_26 = arith.constant 0.000000e+00 : f32
    %31 = vector.broadcast %cst_26 : f32 to vector<128x32xf32>
    %32 = arith.cmpf ogt, %30, %31 : vector<128x32xf32>
    %cst_27 = arith.constant 2.000000e-01 : f32
    %33 = vector.broadcast %cst_27 : f32 to vector<128x32xf32>
    %34 = arith.mulf %33, %30 : vector<128x32xf32>
    %35 = arith.select %32, %30, %34 : vector<128x32xi1>, vector<128x32xf32>
    %36 = arith.mulf %35, %35 : vector<128x32xf32>
    %cst_28 = arith.constant dense<0.000000e+00> : vector<128x4xf32>
    %37 = tpu.matmul %36, %1, %cst_28 {dimension_numbers = #tpu.dot_dimension_numbers<[1], [0], [0], [1], [0, 0, 1, 1], [], []>} : vector<128x32xf32>, vector<32x4xf32>, vector<128x4xf32> -> vector<128x4xf32>
    %cst_29 = arith.constant 1.000000e-24 : f32
    %38 = vector.broadcast %cst_29 : f32 to vector<128x4xf32>
    %39 = arith.maximumf %37, %38 : vector<128x4xf32>
    %40 = math.rsqrt %39 : vector<128x4xf32>
    %cst_30 = arith.constant dense<0.000000e+00> : vector<128x32xf32>
    %41 = tpu.matmul %40, %0, %cst_30 {dimension_numbers = #tpu.dot_dimension_numbers<[1], [0], [0], [1], [0, 0, 1, 1], [], []>} : vector<128x4xf32>, vector<4x32xf32>, vector<128x32xf32> -> vector<128x32xf32>
    %42 = arith.mulf %35, %41 : vector<128x32xf32>
    %c1_31 = arith.constant 1 : index
    %c0_32 = arith.constant 0 : index
    %c0_33 = arith.constant 0 : index
    %43 = vector.load %arg6[%c1_31, %c0_32, %c0_33] : memref<3x128x32xf32, #tpu.memory_space<vmem>>, vector<1x128x32xf32>
    %44 = vector.shape_cast %43 : vector<1x128x32xf32> to vector<128x32xf32>
    %45 = vector.shape_cast %42 : vector<128x32xf32> to vector<1x128x32xf32>
    tpu.vector_store %arg6[%c1_31, %c0_32, %c0_33], %45 {strides = array<i32>} : memref<3x128x32xf32, #tpu.memory_space<vmem>>, vector<1x128x32xf32>,
    %46 = arith.truncf %42 : vector<128x32xf32> to vector<128x32xbf16>
    %c1_34 = arith.constant 1 : index
    %c0_35 = arith.constant 0 : index
    %c0_36 = arith.constant 0 : index
    %47 = vector.load %arg7[%c1_34, %c0_35, %c0_36] : memref<3x128x32xbf16, #tpu.memory_space<vmem>>, vector<1x128x32xbf16>
    %48 = vector.shape_cast %47 : vector<1x128x32xbf16> to vector<128x32xbf16>
    %49 = vector.shape_cast %46 : vector<128x32xbf16> to vector<1x128x32xbf16>
    tpu.vector_store %arg7[%c1_34, %c0_35, %c0_36], %49 {strides = array<i32>} : memref<3x128x32xbf16, #tpu.memory_space<vmem>>, vector<1x128x32xbf16>,
    %c2 = arith.constant 2 : index
    %c0_37 = arith.constant 0 : index
    %c0_38 = arith.constant 0 : index
    %50 = vector.load %arg1[%c2, %c0_37, %c0_38] : memref<3x128x16xf32, #tpu.memory_space<vmem>>, vector<1x128x16xf32>
    %51 = vector.shape_cast %50 : vector<1x128x16xf32> to vector<128x16xf32>
    %c2_39 = arith.constant 2 : index
    %c0_40 = arith.constant 0 : index
    %c0_41 = arith.constant 0 : index
    %52 = vector.load %arg2[%c2_39, %c0_40, %c0_41] : memref<3x16x32xf32, #tpu.memory_space<vmem>>, vector<1x16x32xf32>
    %53 = vector.shape_cast %52 : vector<1x16x32xf32> to vector<16x32xf32>
    %cst_42 = arith.constant dense<0.000000e+00> : vector<128x32xf32>
    %54 = tpu.matmul %51, %53, %cst_42 {dimension_numbers = #tpu.dot_dimension_numbers<[1], [0], [0], [1], [0, 0, 1, 1], [], []>} : vector<128x16xf32>, vector<16x32xf32>, vector<128x32xf32> -> vector<128x32xf32>
    %cst_43 = arith.constant 0.000000e+00 : f32
    %55 = vector.broadcast %cst_43 : f32 to vector<128x32xf32>
    %56 = arith.cmpf ogt, %54, %55 : vector<128x32xf32>
    %cst_44 = arith.constant 2.000000e-01 : f32
    %57 = vector.broadcast %cst_44 : f32 to vector<128x32xf32>
    %58 = arith.mulf %57, %54 : vector<128x32xf32>
    %59 = arith.select %56, %54, %58 : vector<128x32xi1>, vector<128x32xf32>
    %60 = arith.mulf %59, %59 : vector<128x32xf32>
    %cst_45 = arith.constant dense<0.000000e+00> : vector<128x4xf32>
    %61 = tpu.matmul %60, %1, %cst_45 {dimension_numbers = #tpu.dot_dimension_numbers<[1], [0], [0], [1], [0, 0, 1, 1], [], []>} : vector<128x32xf32>, vector<32x4xf32>, vector<128x4xf32> -> vector<128x4xf32>
    %cst_46 = arith.constant 1.000000e-24 : f32
    %62 = vector.broadcast %cst_46 : f32 to vector<128x4xf32>
    %63 = arith.maximumf %61, %62 : vector<128x4xf32>
    %64 = math.rsqrt %63 : vector<128x4xf32>
    %cst_47 = arith.constant dense<0.000000e+00> : vector<128x32xf32>
    %65 = tpu.matmul %64, %0, %cst_47 {dimension_numbers = #tpu.dot_dimension_numbers<[1], [0], [0], [1], [0, 0, 1, 1], [], []>} : vector<128x4xf32>, vector<4x32xf32>, vector<128x32xf32> -> vector<128x32xf32>
    %66 = arith.mulf %59, %65 : vector<128x32xf32>
    %c2_48 = arith.constant 2 : index
    %c0_49 = arith.constant 0 : index
    %c0_50 = arith.constant 0 : index
    %67 = vector.load %arg6[%c2_48, %c0_49, %c0_50] : memref<3x128x32xf32, #tpu.memory_space<vmem>>, vector<1x128x32xf32>
    %68 = vector.shape_cast %67 : vector<1x128x32xf32> to vector<128x32xf32>
    %69 = vector.shape_cast %66 : vector<128x32xf32> to vector<1x128x32xf32>
    tpu.vector_store %arg6[%c2_48, %c0_49, %c0_50], %69 {strides = array<i32>} : memref<3x128x32xf32, #tpu.memory_space<vmem>>, vector<1x128x32xf32>,
    %70 = arith.truncf %66 : vector<128x32xf32> to vector<128x32xbf16>
    %c2_51 = arith.constant 2 : index
    %c0_52 = arith.constant 0 : index
    %c0_53 = arith.constant 0 : index
    %71 = vector.load %arg7[%c2_51, %c0_52, %c0_53] : memref<3x128x32xbf16, #tpu.memory_space<vmem>>, vector<1x128x32xbf16>
    %72 = vector.shape_cast %71 : vector<1x128x32xbf16> to vector<128x32xbf16>
    %73 = vector.shape_cast %70 : vector<128x32xbf16> to vector<1x128x32xbf16>
    tpu.vector_store %arg7[%c2_51, %c0_52, %c0_53], %73 {strides = array<i32>} : memref<3x128x32xbf16, #tpu.memory_space<vmem>>, vector<1x128x32xbf16>,
    %c0_54 = arith.constant 0 : index
    %c0_55 = arith.constant 0 : index
    %c0_56 = arith.constant 0 : index
    %74 = vector.load %arg3[%c0_54, %c0_55, %c0_56] : memref<6x4x32xf32, #tpu.memory_space<vmem>>, vector<1x4x32xf32>
    %75 = vector.shape_cast %74 : vector<1x4x32xf32> to vector<4x32xf32>
    %cst_57 = arith.constant dense<0.000000e+00> : vector<4x128xf32>
    %76 = tpu.matmul %75, %42, %cst_57 {dimension_numbers = #tpu.dot_dimension_numbers<[1], [1], [0], [0], [0, 0, 1, 0], [], []>} : vector<4x32xf32>, vector<128x32xf32>, vector<4x128xf32> -> vector<4x128xf32>
    %c0_58 = arith.constant 0 : index
    %c0_59 = arith.constant 0 : index
    %c0_60 = arith.constant 0 : index
    %77 = vector.load %arg8[%c0_58, %c0_59, %c0_60] : memref<6x4x128xf32, #tpu.memory_space<vmem>>, vector<1x4x128xf32>
    %78 = vector.shape_cast %77 : vector<1x4x128xf32> to vector<4x128xf32>
    %79 = vector.shape_cast %76 : vector<4x128xf32> to vector<1x4x128xf32>
    tpu.vector_store %arg8[%c0_58, %c0_59, %c0_60], %79 {strides = array<i32>} : memref<6x4x128xf32, #tpu.memory_space<vmem>>, vector<1x4x128xf32>,
    %c1_61 = arith.constant 1 : index
    %c0_62 = arith.constant 0 : index
    %c0_63 = arith.constant 0 : index
    %80 = vector.load %arg3[%c1_61, %c0_62, %c0_63] : memref<6x4x32xf32, #tpu.memory_space<vmem>>, vector<1x4x32xf32>
    %81 = vector.shape_cast %80 : vector<1x4x32xf32> to vector<4x32xf32>
    %cst_64 = arith.constant dense<0.000000e+00> : vector<4x128xf32>
    %82 = tpu.matmul %81, %18, %cst_64 {dimension_numbers = #tpu.dot_dimension_numbers<[1], [1], [0], [0], [0, 0, 1, 0], [], []>} : vector<4x32xf32>, vector<128x32xf32>, vector<4x128xf32> -> vector<4x128xf32>
    %c1_65 = arith.constant 1 : index
    %c0_66 = arith.constant 0 : index
    %c0_67 = arith.constant 0 : index
    %83 = vector.load %arg8[%c1_65, %c0_66, %c0_67] : memref<6x4x128xf32, #tpu.memory_space<vmem>>, vector<1x4x128xf32>
    %84 = vector.shape_cast %83 : vector<1x4x128xf32> to vector<4x128xf32>
    %85 = vector.shape_cast %82 : vector<4x128xf32> to vector<1x4x128xf32>
    tpu.vector_store %arg8[%c1_65, %c0_66, %c0_67], %85 {strides = array<i32>} : memref<6x4x128xf32, #tpu.memory_space<vmem>>, vector<1x4x128xf32>,
    %c2_68 = arith.constant 2 : index
    %c0_69 = arith.constant 0 : index
    %c0_70 = arith.constant 0 : index
    %86 = vector.load %arg3[%c2_68, %c0_69, %c0_70] : memref<6x4x32xf32, #tpu.memory_space<vmem>>, vector<1x4x32xf32>
    %87 = vector.shape_cast %86 : vector<1x4x32xf32> to vector<4x32xf32>
    %cst_71 = arith.constant dense<0.000000e+00> : vector<4x128xf32>
    %88 = tpu.matmul %87, %66, %cst_71 {dimension_numbers = #tpu.dot_dimension_numbers<[1], [1], [0], [0], [0, 0, 1, 0], [], []>} : vector<4x32xf32>, vector<128x32xf32>, vector<4x128xf32> -> vector<4x128xf32>
    %c2_72 = arith.constant 2 : index
    %c0_73 = arith.constant 0 : index
    %c0_74 = arith.constant 0 : index
    %89 = vector.load %arg8[%c2_72, %c0_73, %c0_74] : memref<6x4x128xf32, #tpu.memory_space<vmem>>, vector<1x4x128xf32>
    %90 = vector.shape_cast %89 : vector<1x4x128xf32> to vector<4x128xf32>
    %91 = vector.shape_cast %88 : vector<4x128xf32> to vector<1x4x128xf32>
    tpu.vector_store %arg8[%c2_72, %c0_73, %c0_74], %91 {strides = array<i32>} : memref<6x4x128xf32, #tpu.memory_space<vmem>>, vector<1x4x128xf32>,
    %c3 = arith.constant 3 : index
    %c0_75 = arith.constant 0 : index
    %c0_76 = arith.constant 0 : index
    %92 = vector.load %arg3[%c3, %c0_75, %c0_76] : memref<6x4x32xf32, #tpu.memory_space<vmem>>, vector<1x4x32xf32>
    %93 = vector.shape_cast %92 : vector<1x4x32xf32> to vector<4x32xf32>
    %cst_77 = arith.constant dense<0.000000e+00> : vector<4x128xf32>
    %94 = tpu.matmul %93, %18, %cst_77 {dimension_numbers = #tpu.dot_dimension_numbers<[1], [1], [0], [0], [0, 0, 1, 0], [], []>} : vector<4x32xf32>, vector<128x32xf32>, vector<4x128xf32> -> vector<4x128xf32>
    %c3_78 = arith.constant 3 : index
    %c0_79 = arith.constant 0 : index
    %c0_80 = arith.constant 0 : index
    %95 = vector.load %arg8[%c3_78, %c0_79, %c0_80] : memref<6x4x128xf32, #tpu.memory_space<vmem>>, vector<1x4x128xf32>
    %96 = vector.shape_cast %95 : vector<1x4x128xf32> to vector<4x128xf32>
    %97 = vector.shape_cast %94 : vector<4x128xf32> to vector<1x4x128xf32>
    tpu.vector_store %arg8[%c3_78, %c0_79, %c0_80], %97 {strides = array<i32>} : memref<6x4x128xf32, #tpu.memory_space<vmem>>, vector<1x4x128xf32>,
    %c4 = arith.constant 4 : index
    %c0_81 = arith.constant 0 : index
    %c0_82 = arith.constant 0 : index
    %98 = vector.load %arg3[%c4, %c0_81, %c0_82] : memref<6x4x32xf32, #tpu.memory_space<vmem>>, vector<1x4x32xf32>
    %99 = vector.shape_cast %98 : vector<1x4x32xf32> to vector<4x32xf32>
    %cst_83 = arith.constant dense<0.000000e+00> : vector<4x128xf32>
    %100 = tpu.matmul %99, %66, %cst_83 {dimension_numbers = #tpu.dot_dimension_numbers<[1], [1], [0], [0], [0, 0, 1, 0], [], []>} : vector<4x32xf32>, vector<128x32xf32>, vector<4x128xf32> -> vector<4x128xf32>
    %c4_84 = arith.constant 4 : index
    %c0_85 = arith.constant 0 : index
    %c0_86 = arith.constant 0 : index
    %101 = vector.load %arg8[%c4_84, %c0_85, %c0_86] : memref<6x4x128xf32, #tpu.memory_space<vmem>>, vector<1x4x128xf32>
    %102 = vector.shape_cast %101 : vector<1x4x128xf32> to vector<4x128xf32>
    %103 = vector.shape_cast %100 : vector<4x128xf32> to vector<1x4x128xf32>
    tpu.vector_store %arg8[%c4_84, %c0_85, %c0_86], %103 {strides = array<i32>} : memref<6x4x128xf32, #tpu.memory_space<vmem>>, vector<1x4x128xf32>,
    %c5 = arith.constant 5 : index
    %c0_87 = arith.constant 0 : index
    %c0_88 = arith.constant 0 : index
    %104 = vector.load %arg3[%c5, %c0_87, %c0_88] : memref<6x4x32xf32, #tpu.memory_space<vmem>>, vector<1x4x32xf32>
    %105 = vector.shape_cast %104 : vector<1x4x32xf32> to vector<4x32xf32>
    %cst_89 = arith.constant dense<0.000000e+00> : vector<4x128xf32>
    %106 = tpu.matmul %105, %42, %cst_89 {dimension_numbers = #tpu.dot_dimension_numbers<[1], [1], [0], [0], [0, 0, 1, 0], [], []>} : vector<4x32xf32>, vector<128x32xf32>, vector<4x128xf32> -> vector<4x128xf32>
    %c5_90 = arith.constant 5 : index
    %c0_91 = arith.constant 0 : index
    %c0_92 = arith.constant 0 : index
    %107 = vector.load %arg8[%c5_90, %c0_91, %c0_92] : memref<6x4x128xf32, #tpu.memory_space<vmem>>, vector<1x4x128xf32>
    %108 = vector.shape_cast %107 : vector<1x4x128xf32> to vector<4x128xf32>
    %109 = vector.shape_cast %106 : vector<4x128xf32> to vector<1x4x128xf32>
    tpu.vector_store %arg8[%c5_90, %c0_91, %c0_92], %109 {strides = array<i32>} : memref<6x4x128xf32, #tpu.memory_space<vmem>>, vector<1x4x128xf32>,
    return
  }
  func.func @transform_0(%arg0: i32) -> (i32, i32, i32) {
    %c0_i32 = arith.constant 0 : i32
    %c0_i32_0 = arith.constant 0 : i32
    %c0_i32_1 = arith.constant 0 : i32
    %c0_i32_2 = arith.constant 0 : i32
    return %c0_i32, %c0_i32_0, %c0_i32_1 : i32, i32, i32
  }
  func.func @transform_1(%arg0: i32) -> (i32, i32, i32) {
    %c0_i32 = arith.constant 0 : i32
    %c0_i32_0 = arith.constant 0 : i32
    %c0_i32_1 = arith.constant 0 : i32
    %c0_i32_2 = arith.constant 0 : i32
    return %c0_i32, %c0_i32_0, %c0_i32_1 : i32, i32, i32
  }
  func.func @transform_2(%arg0: i32) -> (i32, i32, i32) {
    %c0_i32 = arith.constant 0 : i32
    %c0_i32_0 = arith.constant 0 : i32
    %c0_i32_1 = arith.constant 0 : i32
    %c0_i32_2 = arith.constant 0 : i32
    return %c0_i32, %c0_i32_0, %c0_i32_1 : i32, i32, i32
  }
  func.func @transform_3(%arg0: i32) -> (i32, i32) {
    %c0_i32 = arith.constant 0 : i32
    %c0_i32_0 = arith.constant 0 : i32
    %c0_i32_1 = arith.constant 0 : i32
    return %c0_i32, %c0_i32_0 : i32, i32
  }
  func.func @transform_4(%arg0: i32) -> (i32, i32) {
    %c0_i32 = arith.constant 0 : i32
    %c0_i32_0 = arith.constant 0 : i32
    %c0_i32_1 = arith.constant 0 : i32
    return %c0_i32, %c0_i32_0 : i32, i32
  }
  func.func @transform_5(%arg0: i32) -> (i32, i32, i32) {
    %c0_i32 = arith.constant 0 : i32
    %c0_i32_0 = arith.constant 0 : i32
    %c0_i32_1 = arith.constant 0 : i32
    %c0_i32_2 = arith.constant 0 : i32
    return %c0_i32, %c0_i32_0, %c0_i32_1 : i32, i32, i32
  }
  func.func @transform_6(%arg0: i32) -> (i32, i32, i32) {
    %c0_i32 = arith.constant 0 : i32
    %c0_i32_0 = arith.constant 0 : i32
    %c0_i32_1 = arith.constant 0 : i32
    %c0_i32_2 = arith.constant 0 : i32
    return %c0_i32, %c0_i32_0, %c0_i32_1 : i32, i32, i32
  }
  func.func @transform_7(%arg0: i32) -> (i32, i32, i32) {
    %c0_i32 = arith.constant 0 : i32
    %c0_i32_0 = arith.constant 0 : i32
    %c0_i32_1 = arith.constant 0 : i32
    %c0_i32_2 = arith.constant 0 : i32
    return %c0_i32, %c0_i32_0, %c0_i32_1 : i32, i32, i32
  }
}

</mosaic_0001>

<bundles_post_ra>
// kernel: tpu_custom_call.1
= control target key start
LH: loop header
LB: loop body
LE: loop exit
PB: predicated region body
PF: predicated region fallthrough
CT: control target
= control target key end

     0   :  { %vm47_vm0 = vcmask 130048   ;;  %s4272_s0 = inlined_call_operand.vmem [shape: f32[3,128,16], index: 0, kind: input, shape index: {}]   ;;  %s4273_s1 = inlined_call_operand.vmem [shape: f32[3,16,32], index: 1, kind: input, shape index: {}]   ;;  %s4274_s2 = inlined_call_operand.vmem [shape: f32[6,4,32], index: 2, kind: input, shape index: {}]   ;;  %s4275_s3 = inlined_call_operand.vmem [shape: f32[4,32], index: 3, kind: input, shape index: {}]   ;;  %s4276_s4 = inlined_call_operand.vmem [shape: f32[32,4], index: 4, kind: input, shape index: {}]   ;;  %s4277_s5 = inlined_call_operand.vmem [shape: f32[3,128,32], index: 5, kind: output, shape index: {0}]   ;;  %s4278_s6 = inlined_call_operand.vmem [shape: bf16[3,128,32], index: 6, kind: output, shape index: {1}]   ;;  %s4279_s7 = inlined_call_operand.hbm [shape: f32[6,4,128], index: 7, kind: output, shape index: {2}]  }
   0x1   :  { %v46_v0 = vld [vmem:[%s4273_s1 + $0x8] sm:$0xff]  ;;  %v45_v1 = vld [vmem:[%s4273_s1] sm:$0xff] }
   0x2   :  { %110 = vmatpush.msra.mxu0 %v46_v0  ;;  %v29_v2 = vld [vmem:[%s4272_s0] sm:$0xff] }
   0x3   :  { %13 = vsyncpa [#allocation3], 0  ;;  %v30_v3 = vld [vmem:[%s4272_s0 + $0x8] sm:$0xff]  ;;  %v31_v4 = vld [vmem:[%s4272_s0 + $0x10] sm:$0xff]  ;;  %vm225_vm2 = vcmask 261120   ;;  %s2840_s9 = smov [#allocation2]  }
   0x4   :  { %111 = vmatpush.msra.mxu0 %v45_v1  ;;  %v32_v5 = vld [vmem:[%s4272_s0 + $0x18] sm:$0xff]  ;;  %v33_v6 = vld [vmem:[%s4272_s0 + $0x20] sm:$0xff]  ;;  %v34_v7 = vld [vmem:[%s4272_s0 + $0x28] sm:$0xff]  ;;  %s2340_s10 = sshll.u32 %s2840_s9, 4  ;;  %s2342_s13 = sshll.u32 %s4279_s7, 4  ;;  %s2341_s10 = int_to_ptr.vmem [resolvable:$true] %s2340_s10  ;;  %s2343_s13 = int_to_ptr.hbm [resolvable:$true] %s2342_s13 }
   0x5   :  { %2358 = vmatmul.msk.f32.vlgmr.msra.gmra.mxu0 %vm47_vm0, %v29_v2  ;;  %v35_v8 = vld [vmem:[%s4272_s0 + $0x30] sm:$0xff]  ;;  %v36_v9 = vld [vmem:[%s4272_s0 + $0x38] sm:$0xff]  ;;  %v37_v10 = vld [vmem:[%s4272_s0 + $0x40] sm:$0xff]  ;;  %s2842_s14 = smov 4  }
   0x6   :  { %v38_v11 = vld [vmem:[%s4272_s0 + $0x48] sm:$0xff]  ;;  %v39_v12 = vld [vmem:[%s4272_s0 + $0x50] sm:$0xff]  ;;  %v40_v13 = vld [vmem:[%s4272_s0 + $0x58] sm:$0xff] }
   0x7   :  { %v2940_v14 = vld [vmem:[%s4276_s4 + $0x18] sm:$0xff]  ;;  %v41_v15 = vld [vmem:[%s4272_s0 + $0x60] sm:$0xff]  ;;  %v2949_v16 = vld [vmem:[%s4276_s4 + $0x10] sm:$0xff] }
   0x8   :  { %286 = vmatpush.msra.mxu1 %v2940_v14  ;;  %v2955_v17 = vld [vmem:[%s4276_s4 + $0x8] sm:$0xff]  ;;  %v2960_v18 = vld [vmem:[%s4276_s4] sm:$0xff]  ;;  %v43_v20 = vld [vmem:[%s4272_s0 + $0x70] sm:$0xff] }
   0x9   :  { %v42_v19 = vld [vmem:[%s4272_s0 + $0x68] sm:$0xff]  ;;  %v44_v21 = vld [vmem:[%s4272_s0 + $0x78] sm:$0xff] }
   0xa   :  { %287 = vmatpush.msra.mxu1 %v2949_v16 }
   0xc   :  { %288 = vmatpush.msra.mxu1 %v2955_v17 }
   0xd   :  { %2359 = vmatmul.msk.f32.gmra.mxu0 %vm47_vm0, %v30_v3 }
   0xe   :  { %289 = vmatpush.msra.mxu1 %v2960_v18 }
  0x15   :  { %2360 = vmatmul.msk.f32.gmra.mxu0 %vm47_vm0, %v31_v4 }
  0x1d   :  { %2361 = vmatmul.msk.f32.gmra.mxu0 %vm47_vm0, %v32_v5 }
  0x25   :  { %2362 = vmatmul.msk.f32.gmra.mxu0 %vm47_vm0, %v33_v6 }
  0x2d   :  { %2363 = vmatmul.msk.f32.gmra.mxu0 %vm47_vm0, %v34_v7 }
  0x35   :  { %2364 = vmatmul.msk.f32.gmra.mxu0 %vm47_vm0, %v35_v8 }
  0x3d   :  { %2365 = vmatmul.msk.f32.gmra.mxu0 %vm47_vm0, %v36_v9 }
  0x45   :  { %2366 = vmatmul.msk.f32.gmra.mxu0 %vm47_vm0, %v37_v10 }
  0x4d   :  { %2367 = vmatmul.msk.f32.gmra.mxu0 %vm47_vm0, %v38_v11 }
  0x55   :  { %2368 = vmatmul.msk.f32.gmra.mxu0 %vm47_vm0, %v39_v12 }
  0x5d   :  { %2369 = vmatmul.msk.f32.gmra.mxu0 %vm47_vm0, %v40_v13 }
  0x65   :  { %2370 = vmatmul.msk.f32.gmra.mxu0 %vm47_vm0, %v41_v15 }
  0x6d   :  { %2371 = vmatmul.msk.f32.gmra.mxu0 %vm47_vm0, %v42_v19 }
  0x75   :  { %2372 = vmatmul.msk.f32.gmra.mxu0 %vm47_vm0, %v43_v20 }
  0x7d   :  { %2373 = vmatmul.msk.f32.gmra.mxu0 %vm47_vm0, %v44_v21 }
  0x82   :  { %v113_v22 = vpop.f32.mrf.mxu0 }
  0x83   :  { %vm161_vm1 = vcmp.gt.f32.partialorder %v113_v22, 0.0  ;;  %v177_v23 = vmul.f32 0.2, %v113_v22 }
  0x85   :  { %v2977_v24 = vsel %vm161_vm1, %v113_v22, %v177_v23  ;;  %v3055_v22 = vld [vmem:[%s4275_s3] sm:$0xf] }
  0x86   :  { %v209_v25 = vmul.f32 %v2977_v24, %v2977_v24 }
  0x88   :  { %2374 = vmatmul.msk.f32.vlgmr.msra.gmra.mxu1 %vm225_vm2, %v209_v25 }
  0x8a   :  { %v116_v26 = vpop.f32.mrf.mxu0 }
  0x8b   :  { %vm162_vm3 = vcmp.gt.f32.partialorder %v116_v26, 0.0  ;;  %v178_v27 = vmul.f32 0.2, %v116_v26 }
  0x8d   :  { %v2982_v28 = vsel %vm162_vm3, %v116_v26, %v178_v27  ;;  %vm564_vm3 = vcmask 1043456  }
  0x8e   :  { %v210_v29 = vmul.f32 %v2982_v28, %v2982_v28  ;;  %2390 = vmatpush.msk.msrb.mxu0 %vm564_vm3, %v3055_v22  ;;  %2712 = vmatpush.msk.msrb.mxu1 %vm564_vm3, %v3055_v22 }
  0x8f   :  { %2713 = vmatpush.msk.msra.mxu2 %vm564_vm3, %v3055_v22  ;;  %2714 = vmatpush.msk.msra.mxu3 %vm564_vm3, %v3055_v22 }
  0x90   :  { %2375 = vmatmul.msk.f32.gmra.mxu1 %vm225_vm2, %v210_v29  ;;  %2457 = vmatpush.msk.msra.mxu0 %vm564_vm3, %v3055_v22 }
  0x91   :  { %955 = vmatpush.msrb.mxu2 %v2940_v14  ;;  %1620 = vmatpush.msra.mxu1 %v2940_v14 }
  0x92   :  { %v119_v30 = vpop.f32.mrf.mxu0 }
  0x93   :  { %vm163_vm4 = vcmp.gt.f32.partialorder %v119_v30, 0.0  ;;  %v179_v31 = vmul.f32 0.2, %v119_v30  ;;  %956 = vmatpush.msrb.mxu2 %v2949_v16  ;;  %1621 = vmatpush.msra.mxu1 %v2949_v16 }
  0x95   :  { %v2987_v32 = vsel %vm163_vm4, %v119_v30, %v179_v31  ;;  %957 = vmatpush.msrb.mxu2 %v2955_v17  ;;  %1622 = vmatpush.msra.mxu1 %v2955_v17 }
  0x96   :  { %v211_v33 = vmul.f32 %v2987_v32, %v2987_v32 }
  0x97   :  { %958 = vmatpush.msrb.mxu2 %v2960_v18  ;;  %1623 = vmatpush.msra.mxu1 %v2960_v18 }
  0x98   :  { %2376 = vmatmul.msk.f32.gmra.mxu1 %vm225_vm2, %v211_v33 }
  0x9a   :  { %v122_v34 = vpop.f32.mrf.mxu0 }
  0x9b   :  { %vm164_vm5 = vcmp.gt.f32.partialorder %v122_v34, 0.0  ;;  %v180_v35 = vmul.f32 0.2, %v122_v34 }
  0x9d   :  { %v2992_v36 = vsel %vm164_vm5, %v122_v34, %v180_v35 }
  0x9e   :  { %v212_v37 = vmul.f32 %v2992_v36, %v2992_v36 }
  0xa0   :  { %2377 = vmatmul.msk.f32.gmra.mxu1 %vm225_vm2, %v212_v37 }
  0xa2   :  { %v125_v38 = vpop.f32.mrf.mxu0 }
  0xa3   :  { %vm165_vm6 = vcmp.gt.f32.partialorder %v125_v38, 0.0  ;;  %v181_v39 = vmul.f32 0.2, %v125_v38 }
  0xa5   :  { %v2997_v40 = vsel %vm165_vm6, %v125_v38, %v181_v39 }
  0xa6   :  { %v213_v41 = vmul.f32 %v2997_v40, %v2997_v40 }
  0xa8   :  { %2378 = vmatmul.msk.f32.gmra.mxu1 %vm225_vm2, %v213_v41 }
  0xaa   :  { %v128_v42 = vpop.f32.mrf.mxu0 }
  0xab   :  { %vm166_vm7 = vcmp.gt.f32.partialorder %v128_v42, 0.0  ;;  %v182_v43 = vmul.f32 0.2, %v128_v42 }
  0xad   :  { %v3002_v44 = vsel %vm166_vm7, %v128_v42, %v182_v43  ;;  %vm515_vm7 = vcmask 31744  }
  0xae   :  { %v214_v45 = vmul.f32 %v3002_v44, %v3002_v44 }
  0xb0   :  { %2379 = vmatmul.msk.f32.gmra.mxu1 %vm225_vm2, %v214_v45 }
  0xb2   :  { %v131_v46 = vpop.f32.mrf.mxu0 }
  0xb3   :  { %vm167_vm8 = vcmp.gt.f32.partialorder %v131_v46, 0.0  ;;  %v183_v47 = vmul.f32 0.2, %v131_v46 }
  0xb5   :  { %v3007_v48 = vsel %vm167_vm8, %v131_v46, %v183_v47 }
  0xb6   :  { %v215_v49 = vmul.f32 %v3007_v48, %v3007_v48 }
  0xb8   :  { %2380 = vmatmul.msk.f32.gmra.mxu1 %vm225_vm2, %v215_v49 }
  0xba   :  { %v134_v50 = vpop.f32.mrf.mxu0 }
  0xbb   :  { %vm168_vm9 = vcmp.gt.f32.partialorder %v134_v50, 0.0  ;;  %v184_v51 = vmul.f32 0.2, %v134_v50 }
  0xbd   :  { %v3012_v52 = vsel %vm168_vm9, %v134_v50, %v184_v51 }
  0xbe   :  { %v216_v53 = vmul.f32 %v3012_v52, %v3012_v52 }
  0xc0   :  { %2381 = vmatmul.msk.f32.gmra.mxu1 %vm225_vm2, %v216_v53 }
  0xc2   :  { %v137_v54 = vpop.f32.mrf.mxu0 }
  0xc3   :  { %vm169_vm10 = vcmp.gt.f32.partialorder %v137_v54, 0.0  ;;  %v185_v55 = vmul.f32 0.2, %v137_v54 }
  0xc5   :  { %v3017_v56 = vsel %vm169_vm10, %v137_v54, %v185_v55 }
  0xc6   :  { %v217_v57 = vmul.f32 %v3017_v56, %v3017_v56 }
  0xc8   :  { %2382 = vmatmul.msk.f32.gmra.mxu1 %vm225_vm2, %v217_v57 }
  0xca   :  { %v140_v58 = vpop.f32.mrf.mxu0 }
  0xcb   :  { %vm170_vm11 = vcmp.gt.f32.partialorder %v140_v58, 0.0  ;;  %v186_v59 = vmul.f32 0.2, %v140_v58 }
  0xcd   :  { %v3022_v60 = vsel %vm170_vm11, %v140_v58, %v186_v59 }
  0xce   :  { %v218_v61 = vmul.f32 %v3022_v60, %v3022_v60 }
  0xd0   :  { %2383 = vmatmul.msk.f32.gmra.mxu1 %vm225_vm2, %v218_v61 }
  0xd2   :  { %v143_v62 = vpop.f32.mrf.mxu0 }
  0xd3   :  { %vm171_vm12 = vcmp.gt.f32.partialorder %v143_v62, 0.0  ;;  %v187_v63 = vmul.f32 0.2, %v143_v62 }
  0xd5   :  { %v3027_v0 = vsel %vm171_vm12, %v143_v62, %v187_v63 }
  0xd6   :  { %v219_v1 = vmul.f32 %v3027_v0, %v3027_v0 }
  0xd8   :  { %2384 = vmatmul.msk.f32.gmra.mxu1 %vm225_vm2, %v219_v1 }
  0xda   :  { %v146_v2 = vpop.f32.mrf.mxu0 }
  0xdb   :  { %vm172_vm13 = vcmp.gt.f32.partialorder %v146_v2, 0.0  ;;  %v188_v3 = vmul.f32 0.2, %v146_v2 }
  0xdd   :  { %v3032_v4 = vsel %vm172_vm13, %v146_v2, %v188_v3 }
  0xde   :  { %v220_v5 = vmul.f32 %v3032_v4, %v3032_v4 }
  0xe0   :  { %2385 = vmatmul.msk.f32.gmra.mxu1 %vm225_vm2, %v220_v5 }
  0xe2   :  { %v149_v6 = vpop.f32.mrf.mxu0 }
  0xe3   :  { %vm173_vm14 = vcmp.gt.f32.partialorder %v149_v6, 0.0  ;;  %v189_v7 = vmul.f32 0.2, %v149_v6 }
  0xe5   :  { %v3037_v8 = vsel %vm173_vm14, %v149_v6, %v189_v7 }
  0xe6   :  { %v221_v9 = vmul.f32 %v3037_v8, %v3037_v8 }
  0xe8   :  { %2386 = vmatmul.msk.f32.gmra.mxu1 %vm225_vm2, %v221_v9 }
  0xea   :  { %v152_v10 = vpop.f32.mrf.mxu0 }
  0xeb   :  { %vm174_vm15 = vcmp.gt.f32.partialorder %v152_v10, 0.0  ;;  %v190_v11 = vmul.f32 0.2, %v152_v10 }
  0xed   :  { %v3042_v12 = vsel %vm174_vm15, %v152_v10, %v190_v11 }
  0xee   :  { %v222_v13 = vmul.f32 %v3042_v12, %v3042_v12 }
  0xf0   :  { %2387 = vmatmul.msk.f32.gmra.mxu1 %vm225_vm2, %v222_v13 }
  0xf2   :  { %v155_v15 = vpop.f32.mrf.mxu0 }
  0xf3   :  { %vm175_vm1 = vcmp.gt.f32.partialorder %v155_v15, 0.0  ;;  %v191_v19 = vmul.f32 0.2, %v155_v15 }
  0xf5   :  { %v3047_v20 = vsel %vm175_vm1, %v155_v15, %v191_v19 }
  0xf6   :  { %v223_v21 = vmul.f32 %v3047_v20, %v3047_v20 }
  0xf8   :  { %2388 = vmatmul.msk.f32.gmra.mxu1 %vm225_vm2, %v223_v21 }
  0xfa   :  { %v158_v23 = vpop.f32.mrf.mxu0 }
  0xfb   :  { %vm176_vm4 = vcmp.gt.f32.partialorder %v158_v23, 0.0  ;;  %v192_v25 = vmul.f32 0.2, %v158_v23 }
  0xfd   :  { %v3069_v26 = vsel %vm176_vm4, %v158_v23, %v192_v25 }
  0xfe   :  { %v224_v27 = vmul.f32 %v3069_v26, %v3069_v26 }
 0x100   :  { %2389 = vmatmul.msk.f32.gmra.mxu1 %vm225_vm2, %v224_v27 }
 0x105   :  { %v291_v14 = vpop.f32.mrf.mxu1 }
 0x106   :  { %v339_v29 = vmax.f32 %v291_v14, 1e-24 }
 0x108   :  { %2718 = vrsqrt.f32 %v339_v29  ;;  %vm361_vm6 = vweird.f32 %v339_v29 }
 0x10d   :  { %v294_v30 = vpop.f32.mrf.mxu1 }
 0x10e   :  { %v2719_v31 = vpop.eup %2718  ;;  %v340_v33 = vmax.f32 %v294_v30, 1e-24 }
 0x10f   :  { %v356_v16 = vmul.f32 %v2719_v31, %v339_v29  ;;  %vm362_vm5 = vweird.f32 %v2719_v31 }
 0x110   :  { %2720 = vrsqrt.f32 %v340_v33  ;;  %vm363_vm8 = vmor %vm361_vm6, %vm362_vm5  ;;  %vm371_vm10 = vweird.f32 %v340_v33 }
 0x111   :  { %v357_v34 = vmul.f32 %v2719_v31, %v356_v16 }
 0x113   :  { %v358_v35 = vmul.f32 0.5, %v357_v34 }
 0x115   :  { %v359_v37 = vsub.f32 1.5, %v358_v35  ;;  %v297_v38 = vpop.f32.mrf.mxu1 }
 0x116   :  { %v2721_v17 = vpop.eup %2720  ;;  %v341_v39 = vmax.f32 %v297_v38, 1e-24 }
 0x117   :  { %v366_v41 = vmul.f32 %v2721_v17, %v340_v33  ;;  %v360_v42 = vmul.f32 %v2719_v31, %v359_v37  ;;  %vm372_vm9 = vweird.f32 %v2721_v17 }
 0x118   :  { %2722 = vrsqrt.f32 %v341_v39  ;;  %vm373_vm11 = vmor %vm371_vm10, %vm372_vm9  ;;  %vm381_vm13 = vweird.f32 %v341_v39 }
 0x119   :  { %v367_v18 = vmul.f32 %v2721_v17, %v366_v41  ;;  %v364_v43 = vsel %vm363_vm8, %v2719_v31, %v360_v42 }
 0x11a   :  { %2391 = vmatmul.msk.f32.vlgmr.msrb.gmra.mxu0 %vm515_vm7, %v364_v43 }
 0x11b   :  { %v368_v45 = vmul.f32 0.5, %v367_v18 }
 0x11d   :  { %v300_v46 = vpop.f32.mrf.mxu1  ;;  %v369_v47 = vsub.f32 1.5, %v368_v45 }
 0x11e   :  { %v2723_v49 = vpop.eup %2722  ;;  %v342_v50 = vmax.f32 %v300_v46, 1e-24 }
 0x11f   :  { %v376_v51 = vmul.f32 %v2723_v49, %v341_v39  ;;  %v370_v53 = vmul.f32 %v2721_v17, %v369_v47  ;;  %vm382_vm12 = vweird.f32 %v2723_v49 }
 0x120   :  { %2724 = vrsqrt.f32 %v342_v50  ;;  %vm383_vm14 = vmor %vm381_vm13, %vm382_vm12  ;;  %vm391_vm1 = vweird.f32 %v342_v50 }
 0x121   :  { %v377_v54 = vmul.f32 %v2723_v49, %v376_v51  ;;  %v374_v55 = vsel %vm373_vm11, %v2721_v17, %v370_v53 }
 0x122   :  { %2392 = vmatmul.msk.f32.gmra.mxu0 %vm515_vm7, %v374_v55 }
 0x123   :  { %v378_v57 = vmul.f32 0.5, %v377_v54 }
 0x125   :  { %v379_v58 = vsub.f32 1.5, %v378_v57  ;;  %v303_v59 = vpop.f32.mrf.mxu1 }
 0x126   :  { %v2725_v61 = vpop.eup %2724  ;;  %v343_v62 = vmax.f32 %v303_v59, 1e-24 }
 0x127   :  { %v386_v63 = vmul.f32 %v2725_v61, %v342_v50  ;;  %v380_v1 = vmul.f32 %v2723_v49, %v379_v58  ;;  %vm392_vm15 = vweird.f32 %v2725_v61 }
 0x128   :  { %2726 = vrsqrt.f32 %v343_v62  ;;  %vm393_vm4 = vmor %vm391_vm1, %vm392_vm15  ;;  %vm401_vm6 = vweird.f32 %v343_v62 }
 0x129   :  { %v387_v2 = vmul.f32 %v2725_v61, %v386_v63  ;;  %v384_v3 = vsel %vm383_vm14, %v2723_v49, %v380_v1 }
 0x12a   :  { %2393 = vmatmul.msk.f32.vlgmr.msrb.gmra.mxu1 %vm515_vm7, %v384_v3 }
 0x12b   :  { %v388_v5 = vmul.f32 0.5, %v387_v2 }
 0x12d   :  { %v306_v6 = vpop.f32.mrf.mxu1  ;;  %v389_v7 = vsub.f32 1.5, %v388_v5 }
 0x12e   :  { %v2727_v9 = vpop.eup %2726  ;;  %v344_v10 = vmax.f32 %v306_v6, 1e-24 }
 0x12f   :  { %v396_v11 = vmul.f32 %v2727_v9, %v343_v62  ;;  %v390_v13 = vmul.f32 %v2725_v61, %v389_v7  ;;  %vm402_vm5 = vweird.f32 %v2727_v9 }
 0x130   :  { %2728 = vrsqrt.f32 %v344_v10  ;;  %vm403_vm8 = vmor %vm401_vm6, %vm402_vm5 }
 0x131   :  { %v397_v15 = vmul.f32 %v2727_v9, %v396_v11  ;;  %v394_v19 = vsel %vm393_vm4, %v2725_v61, %v390_v13 }
 0x132   :  { %2394 = vmatmul.msk.f32.vlgmr.msra.gmra.mxu2 %vm515_vm7, %v394_v19 }
 0x133   :  { %v398_v21 = vmul.f32 0.5, %v397_v15  ;;  %2556 = vmatpush.msk.msra.mxu2 %vm564_vm3, %v3055_v22  ;;  %vm411_vm3 = vweird.f32 %v344_v10 }
 0x135   :  { %v309_v23 = vpop.f32.mrf.mxu1  ;;  %v399_v25 = vsub.f32 1.5, %v398_v21 }
 0x136   :  { %v2729_v27 = vpop.eup %2728  ;;  %v345_v14 = vmax.f32 %v309_v23, 1e-24 }
 0x137   :  { %v406_v29 = vmul.f32 %v2729_v27, %v344_v10  ;;  %v400_v30 = vmul.f32 %v2727_v9, %v399_v25  ;;  %vm412_vm9 = vweird.f32 %v2729_v27 }
 0x138   :  { %2730 = vrsqrt.f32 %v345_v14  ;;  %vm413_vm10 = vmor %vm411_vm3, %vm412_vm9  ;;  %vm421_vm12 = vweird.f32 %v345_v14 }
 0x139   :  { %v407_v31 = vmul.f32 %v2729_v27, %v406_v29  ;;  %v404_v33 = vsel %vm403_vm8, %v2727_v9, %v400_v30 }
 0x13a   :  { %2395 = vmatmul.msk.f32.gmra.mxu2 %vm515_vm7, %v404_v33 }
 0x13b   :  { %v408_v16 = vmul.f32 0.5, %v407_v31 }
 0x13d   :  { %v312_v34 = vpop.f32.mrf.mxu1  ;;  %v409_v35 = vsub.f32 1.5, %v408_v16 }
 0x13e   :  { %v2731_v37 = vpop.eup %2730  ;;  %v346_v22 = vmax.f32 %v312_v34, 1e-24 }
 0x13f   :  { %v416_v38 = vmul.f32 %v2731_v37, %v345_v14  ;;  %v410_v17 = vmul.f32 %v2729_v27, %v409_v35  ;;  %vm422_vm11 = vweird.f32 %v2731_v37 }
 0x140   :  { %2732 = vrsqrt.f32 %v346_v22  ;;  %vm423_vm13 = vmor %vm421_vm12, %vm422_vm11  ;;  %vm431_vm15 = vweird.f32 %v346_v22 }
 0x141   :  { %v417_v39 = vmul.f32 %v2731_v37, %v416_v38  ;;  %v414_v41 = vsel %vm413_vm10, %v2729_v27, %v410_v17 }
 0x142   :  { %2396 = vmatmul.msk.f32.gmra.mxu2 %vm515_vm7, %v414_v41 }
 0x143   :  { %v418_v42 = vmul.f32 0.5, %v417_v39 }
 0x145   :  { %v315_v18 = vpop.f32.mrf.mxu1  ;;  %v419_v43 = vsub.f32 1.5, %v418_v42 }
 0x146   :  { %v2733_v45 = vpop.eup %2732  ;;  %v347_v46 = vmax.f32 %v315_v18, 1e-24 }
 0x147   :  { %v426_v47 = vmul.f32 %v2733_v45, %v346_v22  ;;  %v420_v49 = vmul.f32 %v2731_v37, %v419_v43  ;;  %vm432_vm14 = vweird.f32 %v2733_v45 }
 0x148   :  { %2734 = vrsqrt.f32 %v347_v46  ;;  %vm433_vm1 = vmor %vm431_vm15, %vm432_vm14  ;;  %vm441_vm5 = vweird.f32 %v347_v46 }
 0x149   :  { %v427_v50 = vmul.f32 %v2733_v45, %v426_v47  ;;  %v424_v51 = vsel %vm423_vm13, %v2731_v37, %v420_v49 }
 0x14a   :  { %2397 = vmatmul.msk.f32.gmra.mxu2 %vm515_vm7, %v424_v51 }
 0x14b   :  { %v428_v53 = vmul.f32 0.5, %v427_v50 }
 0x14d   :  { %v318_v54 = vpop.f32.mrf.mxu1  ;;  %v429_v55 = vsub.f32 1.5, %v428_v53 }
 0x14e   :  { %v2735_v57 = vpop.eup %2734  ;;  %v348_v58 = vmax.f32 %v318_v54, 1e-24 }
 0x14f   :  { %v436_v59 = vmul.f32 %v2735_v57, %v347_v46  ;;  %v430_v61 = vmul.f32 %v2733_v45, %v429_v55  ;;  %vm442_vm4 = vweird.f32 %v2735_v57  ;;  %v2424_v55 = vld [vmem:[%s4273_s1 + $0x18] sm:$0xff] }
 0x150   :  { %2736 = vrsqrt.f32 %v348_v58  ;;  %vm443_vm6 = vmor %vm441_vm5, %vm442_vm4  ;;  %vm451_vm9 = vweird.f32 %v348_v58  ;;  %780 = vmatpush.msrb.mxu3 %v2424_v55  ;;  %v2414_v55 = vld [vmem:[%s4272_s0 + $0xb8] sm:$0xff] }
 0x151   :  { %v437_v62 = vmul.f32 %v2735_v57, %v436_v59  ;;  %v434_v63 = vsel %vm433_vm1, %v2733_v45, %v430_v61  ;;  %v2423_v59 = vld [vmem:[%s4273_s1 + $0x10] sm:$0xff] }
 0x152   :  { %2398 = vmatmul.msk.f32.gmra.mxu2 %vm515_vm7, %v434_v63  ;;  %781 = vmatpush.msrb.mxu3 %v2423_v59  ;;  %v2415_v59 = vld [vmem:[%s4272_s0 + $0xc0] sm:$0xff] }
 0x153   :  { %v438_v1 = vmul.f32 0.5, %v437_v62 }
 0x155   :  { %v321_v2 = vpop.f32.mrf.mxu1  ;;  %v439_v3 = vsub.f32 1.5, %v438_v1 }
 0x156   :  { %v2737_v5 = vpop.eup %2736  ;;  %v349_v6 = vmax.f32 %v321_v2, 1e-24 }
 0x157   :  { %v446_v7 = vmul.f32 %v2737_v5, %v348_v58  ;;  %v440_v9 = vmul.f32 %v2735_v57, %v439_v3  ;;  %vm452_vm8 = vweird.f32 %v2737_v5 }
 0x158   :  { %2738 = vrsqrt.f32 %v349_v6  ;;  %vm453_vm3 = vmor %vm451_vm9, %vm452_vm8  ;;  %vm461_vm11 = vweird.f32 %v349_v6 }
 0x159   :  { %v447_v10 = vmul.f32 %v2737_v5, %v446_v7  ;;  %v444_v11 = vsel %vm443_vm6, %v2735_v57, %v440_v9 }
 0x15a   :  { %2399 = vmatmul.msk.f32.gmra.mxu2 %vm515_vm7, %v444_v11 }
 0x15b   :  { %v448_v13 = vmul.f32 0.5, %v447_v10 }
 0x15d   :  { %v324_v15 = vpop.f32.mrf.mxu1  ;;  %v449_v19 = vsub.f32 1.5, %v448_v13 }
 0x15e   :  { %v2739_v21 = vpop.eup %2738  ;;  %v350_v23 = vmax.f32 %v324_v15, 1e-24 }
 0x15f   :  { %v456_v25 = vmul.f32 %v2739_v21, %v349_v6  ;;  %v450_v27 = vmul.f32 %v2737_v5, %v449_v19  ;;  %vm462_vm10 = vweird.f32 %v2739_v21 }
 0x160   :  { %2740 = vrsqrt.f32 %v350_v23  ;;  %vm463_vm12 = vmor %vm461_vm11, %vm462_vm10  ;;  %vm471_vm14 = vweird.f32 %v350_v23 }
 0x161   :  { %v457_v14 = vmul.f32 %v2739_v21, %v456_v25  ;;  %v454_v29 = vsel %vm453_vm3, %v2737_v5, %v450_v27 }
 0x162   :  { %2400 = vmatmul.msk.f32.gmra.mxu2 %vm515_vm7, %v454_v29 }
 0x163   :  { %v458_v30 = vmul.f32 0.5, %v457_v14 }
 0x165   :  { %v327_v31 = vpop.f32.mrf.mxu1  ;;  %v459_v33 = vsub.f32 1.5, %v458_v30 }
 0x166   :  { %v2741_v16 = vpop.eup %2740  ;;  %v351_v34 = vmax.f32 %v327_v31, 1e-24 }
 0x167   :  { %v466_v35 = vmul.f32 %v2741_v16, %v350_v23  ;;  %v460_v37 = vmul.f32 %v2739_v21, %v459_v33  ;;  %vm472_vm13 = vweird.f32 %v2741_v16  ;;  %v2407_v33 = vld [vmem:[%s4272_s0 + $0x80] sm:$0xff] }
 0x168   :  { %2742 = vrsqrt.f32 %v351_v34  ;;  %vm473_vm15 = vmor %vm471_vm14, %vm472_vm13  ;;  %vm481_vm4 = vweird.f32 %v351_v34 }
 0x169   :  { %v467_v22 = vmul.f32 %v2741_v16, %v466_v35  ;;  %v464_v38 = vsel %vm463_vm12, %v2739_v21, %v460_v37 }
 0x16a   :  { %2401 = vmatmul.msk.f32.gmra.mxu2 %vm515_vm7, %v464_v38 }
 0x16b   :  { %v468_v17 = vmul.f32 0.5, %v467_v22 }
 0x16d   :  { %v469_v39 = vsub.f32 1.5, %v468_v17  ;;  %v330_v41 = vpop.f32.mrf.mxu1 }
 0x16e   :  { %v2743_v42 = vpop.eup %2742  ;;  %v352_v18 = vmax.f32 %v330_v41, 1e-24 }
 0x16f   :  { %v476_v43 = vmul.f32 %v2743_v42, %v351_v34  ;;  %v470_v45 = vmul.f32 %v2741_v16, %v469_v39  ;;  %vm482_vm1 = vweird.f32 %v2743_v42 }
 0x170   :  { %2744 = vrsqrt.f32 %v352_v18  ;;  %vm483_vm5 = vmor %vm481_vm4, %vm482_vm1  ;;  %vm491_vm8 = vweird.f32 %v352_v18 }
 0x171   :  { %v477_v46 = vmul.f32 %v2743_v42, %v476_v43  ;;  %v474_v47 = vsel %vm473_vm15, %v2741_v16, %v470_v45  ;;  %vm681_vm15 = vcmask 257024  }
 0x172   :  { %2402 = vmatmul.msk.f32.gmra.mxu2 %vm515_vm7, %v474_v47  ;;  %v2412_v47 = vld [vmem:[%s4272_s0 + $0xa8] sm:$0xff] }
 0x173   :  { %v478_v49 = vmul.f32 0.5, %v477_v46 }
 0x175   :  { %v479_v50 = vsub.f32 1.5, %v478_v49  ;;  %v333_v51 = vpop.f32.mrf.mxu1 }
 0x176   :  { %v2745_v53 = vpop.eup %2744  ;;  %v353_v54 = vmax.f32 %v333_v51, 1e-24  ;;  %v2413_v51 = vld [vmem:[%s4272_s0 + $0xb0] sm:$0xff] }
 0x177   :  { %v486_v57 = vmul.f32 %v2745_v53, %v352_v18  ;;  %v480_v58 = vmul.f32 %v2743_v42, %v479_v50  ;;  %vm492_vm6 = vweird.f32 %v2745_v53  ;;  %v2411_v18 = vld [vmem:[%s4272_s0 + $0xa0] sm:$0xff] }
 0x178   :  { %2746 = vrsqrt.f32 %v353_v54  ;;  %vm493_vm9 = vmor %vm491_vm8, %vm492_vm6  ;;  %vm501_vm10 = vweird.f32 %v353_v54 }
 0x179   :  { %v487_v61 = vmul.f32 %v2745_v53, %v486_v57  ;;  %v484_v62 = vsel %vm483_vm5, %v2743_v42, %v480_v58 }
 0x17a   :  { %2403 = vmatmul.msk.f32.gmra.mxu2 %vm515_vm7, %v484_v62 }
 0x17b   :  { %v488_v63 = vmul.f32 0.5, %v487_v61 }
 0x17d   :  { %v489_v1 = vsub.f32 1.5, %v488_v63  ;;  %v336_v2 = vpop.f32.mrf.mxu1  ;;  %v2416_v63 = vld [vmem:[%s4272_s0 + $0xc8] sm:$0xff] }
 0x17e   :  { %v2747_v3 = vpop.eup %2746  ;;  %v354_v5 = vmax.f32 %v336_v2, 1e-24 }
 0x17f   :  { %v496_v6 = vmul.f32 %v2747_v3, %v353_v54  ;;  %v490_v7 = vmul.f32 %v2745_v53, %v489_v1  ;;  %vm502_vm3 = vweird.f32 %v2747_v3 }
 0x180   :  { %2748 = vrsqrt.f32 %v354_v5  ;;  %vm503_vm11 = vmor %vm501_vm10, %vm502_vm3  ;;  %vm511_vm13 = vweird.f32 %v354_v5 }
 0x181   :  { %v497_v9 = vmul.f32 %v2747_v3, %v496_v6  ;;  %v494_v10 = vsel %vm493_vm9, %v2745_v53, %v490_v7  ;;  %v2418_v7 = vld [vmem:[%s4272_s0 + $0xd8] sm:$0xff] }
 0x182   :  { %2404 = vmatmul.msk.f32.gmra.mxu2 %vm515_vm7, %v494_v10 }
 0x183   :  { %v498_v11 = vmul.f32 0.5, %v497_v9 }
 0x185   :  { %v499_v13 = vsub.f32 1.5, %v498_v11  ;;  %v2522_v11 = vld [vmem:[%s4273_s1 + $0x20] sm:$0xff] }
 0x186   :  { %v2749_v15 = vpop.eup %2748 }
 0x187   :  { %v506_v19 = vmul.f32 %v2749_v15, %v354_v5  ;;  %v500_v21 = vmul.f32 %v2747_v3, %v499_v13  ;;  %vm512_vm12 = vweird.f32 %v2749_v15  ;;  %v2419_v13 = vld [vmem:[%s4272_s0 + $0xe0] sm:$0xff] }
 0x188   :  { %vm513_vm14 = vmor %vm511_vm13, %vm512_vm12 }
 0x189   :  { %v507_v23 = vmul.f32 %v2749_v15, %v506_v19  ;;  %v504_v25 = vsel %vm503_vm11, %v2747_v3, %v500_v21  ;;  %v2417_v3 = vld [vmem:[%s4272_s0 + $0xd0] sm:$0xff]  ;;  %v2420_v21 = vld [vmem:[%s4272_s0 + $0xe8] sm:$0xff] }
 0x18a   :  { %2405 = vmatmul.msk.f32.vlgmr.msra.gmra.mxu3 %vm515_vm7, %v504_v25 }
 0x18b   :  { %v508_v27 = vmul.f32 0.5, %v507_v23 }
 0x18d   :  { %v509_v14 = vsub.f32 1.5, %v508_v27  ;;  %v2421_v27 = vld [vmem:[%s4272_s0 + $0xf0] sm:$0xff] }
 0x18f   :  { %v510_v29 = vmul.f32 %v2749_v15, %v509_v14 }
 0x191   :  { %v514_v30 = vsel %vm513_vm14, %v2749_v15, %v510_v29 }
 0x192   :  { %2406 = vmatmul.msk.f32.gmra.mxu3 %vm515_vm7, %v514_v30  ;;  %v2422_v30 = vld [vmem:[%s4272_s0 + $0xf8] sm:$0xff] }
 0x197   :  { %v585_v31 = vpop.f32.mrf.mxu0 }
 0x198   :  { %v3108_v16 = vmul.f32 %v585_v31, %v2977_v24  ;;  %v2408_v24 = vld [vmem:[%s4272_s0 + $0x88] sm:$0xff] }
 0x19a   :  { %4285 = vst [vmem:[#allocation5_spill] sm:$0xff] %v3108_v16  ;;  %v665_v34 = vpack.c.bf16 %v3108_v16, %v3108_v16  ;;  %2425 = vmatmul.msk.f32.vlgmr.msrb.gmra.mxu3 %vm47_vm0, %v2407_v33 }
 0x19b   :  { %649 = vst.msk [vmem:[%s4277_s5] sm:$0xff] %vm225_vm2, %v3108_v16 }
 0x19c   :  { %682 = vst.msk [vmem:[%s4278_s6] sm:$0xf] %vm681_vm15, %v665_v34  ;;  %v2506_v34 = vld [vmem:[%s4272_s0 + $0x100] sm:$0xff] }
 0x19f   :  { %v588_v35 = vpop.f32.mrf.mxu0 }
 0x1a0   :  { %v3126_v37 = vmul.f32 %v588_v35, %v2982_v28  ;;  %v2409_v28 = vld [vmem:[%s4272_s0 + $0x90] sm:$0xff] }
 0x1a2   :  { %4286 = vst [vmem:[#allocation6_spill] sm:$0xff] %v3126_v37  ;;  %v666_v22 = vpack.c.bf16 %v3126_v37, %v3126_v37  ;;  %2426 = vmatmul.msk.f32.gmra.mxu3 %vm47_vm0, %v2408_v24 }
 0x1a3   :  { %650 = vst.msk [vmem:[%s4277_s5 + $0x8] sm:$0xff] %vm225_vm2, %v3126_v37 }
 0x1a4   :  { %683 = vst.msk [vmem:[%s4278_s6 + $0x4] sm:$0xf] %vm681_vm15, %v666_v22  ;;  %v2507_v22 = vld [vmem:[%s4272_s0 + $0x108] sm:$0xff] }
 0x1a7   :  { %v591_v38 = vpop.f32.mrf.mxu1 }
 0x1a8   :  { %v3144_v17 = vmul.f32 %v591_v38, %v2987_v32  ;;  %v2410_v32 = vld [vmem:[%s4272_s0 + $0x98] sm:$0xff] }
 0x1aa   :  { %4287 = vst [vmem:[#allocation7_spill] sm:$0xff] %v3144_v17  ;;  %v667_v39 = vpack.c.bf16 %v3144_v17, %v3144_v17  ;;  %2427 = vmatmul.msk.f32.gmra.mxu3 %vm47_vm0, %v2409_v28 }
 0x1ab   :  { %651 = vst.msk [vmem:[%s4277_s5 + $0x10] sm:$0xff] %vm225_vm2, %v3144_v17 }
 0x1ac   :  { %684 = vst.msk [vmem:[%s4278_s6 + $0x8] sm:$0xf] %vm681_vm15, %v667_v39 }
 0x1b2   :  { %2428 = vmatmul.msk.f32.gmra.mxu3 %vm47_vm0, %v2410_v32 }
 0x1b5   :  { %v594_v41 = vpop.f32.mrf.mxu2 }
 0x1b6   :  { %v3163_v42 = vmul.f32 %v594_v41, %v2992_v36  ;;  %v2523_v36 = vld [vmem:[%s4273_s1 + $0x28] sm:$0xff]  ;;  %v2508_v41 = vld [vmem:[%s4272_s0 + $0x110] sm:$0xff] }
 0x1b7   :  { %1445 = vmatpush.msra.mxu3 %v2523_v36 }
 0x1b8   :  { %652 = vst.msk [vmem:[%s4277_s5 + $0x18] sm:$0xff] %vm225_vm2, %v3163_v42  ;;  %v668_v43 = vpack.c.bf16 %v3163_v42, %v3163_v42 }
 0x1b9   :  { %1446 = vmatpush.msra.mxu3 %v2522_v11 }
 0x1ba   :  { %685 = vst.msk [vmem:[%s4278_s6 + $0xc] sm:$0xf] %vm681_vm15, %v668_v43  ;;  %2429 = vmatmul.msk.f32.gmra.mxu3 %vm47_vm0, %v2411_v18 }
 0x1bd   :  { %v597_v45 = vpop.f32.mrf.mxu2 }
 0x1be   :  { %v3184_v46 = vmul.f32 %v597_v45, %v2997_v40 }
 0x1c0   :  { %653 = vst.msk [vmem:[%s4277_s5 + $0x20] sm:$0xff] %vm225_vm2, %v3184_v46  ;;  %v669_v49 = vpack.c.bf16 %v3184_v46, %v3184_v46 }
 0x1c2   :  { %686 = vst.msk [vmem:[%s4278_s6 + $0x10] sm:$0xf] %vm681_vm15, %v669_v49  ;;  %2430 = vmatmul.msk.f32.gmra.mxu3 %vm47_vm0, %v2412_v47  ;;  %v2509_v47 = vld [vmem:[%s4272_s0 + $0x118] sm:$0xff] }
 0x1c5   :  { %v600_v40 = vpop.f32.mrf.mxu2 }
 0x1c6   :  { %v3202_v50 = vmul.f32 %v600_v40, %v3002_v44 }
 0x1c8   :  { %654 = vst.msk [vmem:[%s4277_s5 + $0x28] sm:$0xff] %vm225_vm2, %v3202_v50  ;;  %v670_v53 = vpack.c.bf16 %v3202_v50, %v3202_v50 }
 0x1ca   :  { %687 = vst.msk [vmem:[%s4278_s6 + $0x14] sm:$0xf] %vm681_vm15, %v670_v53  ;;  %2431 = vmatmul.msk.f32.gmra.mxu3 %vm47_vm0, %v2413_v51 }
 0x1cd   :  { %v603_v44 = vpop.f32.mrf.mxu2 }
 0x1ce   :  { %v3220_v54 = vmul.f32 %v603_v44, %v3007_v48  ;;  %v2510_v44 = vld [vmem:[%s4272_s0 + $0x120] sm:$0xff] }
 0x1d0   :  { %655 = vst.msk [vmem:[%s4277_s5 + $0x30] sm:$0xff] %vm225_vm2, %v3220_v54  ;;  %v671_v57 = vpack.c.bf16 %v3220_v54, %v3220_v54 }
 0x1d2   :  { %688 = vst.msk [vmem:[%s4278_s6 + $0x18] sm:$0xf] %vm681_vm15, %v671_v57  ;;  %2432 = vmatmul.msk.f32.gmra.mxu3 %vm47_vm0, %v2414_v55 }
 0x1d5   :  { %v606_v48 = vpop.f32.mrf.mxu2 }
 0x1d6   :  { %v3238_v58 = vmul.f32 %v606_v48, %v3012_v52 }
 0x1d8   :  { %656 = vst.msk [vmem:[%s4277_s5 + $0x38] sm:$0xff] %vm225_vm2, %v3238_v58  ;;  %v672_v61 = vpack.c.bf16 %v3238_v58, %v3238_v58 }
 0x1da   :  { %689 = vst.msk [vmem:[%s4278_s6 + $0x1c] sm:$0xf] %vm681_vm15, %v672_v61  ;;  %2433 = vmatmul.msk.f32.gmra.mxu3 %vm47_vm0, %v2415_v59  ;;  %v2511_v61 = vld [vmem:[%s4272_s0 + $0x128] sm:$0xff] }
 0x1dd   :  { %v609_v52 = vpop.f32.mrf.mxu2 }
 0x1de   :  { %v3256_v62 = vmul.f32 %v609_v52, %v3017_v56 }
 0x1e0   :  { %657 = vst.msk [vmem:[%s4277_s5 + $0x40] sm:$0xff] %vm225_vm2, %v3256_v62  ;;  %v673_v1 = vpack.c.bf16 %v3256_v62, %v3256_v62 }
 0x1e2   :  { %690 = vst.msk [vmem:[%s4278_s6 + $0x20] sm:$0xf] %vm681_vm15, %v673_v1  ;;  %2434 = vmatmul.msk.f32.gmra.mxu3 %vm47_vm0, %v2416_v63 }
 0x1e5   :  { %v612_v56 = vpop.f32.mrf.mxu2 }
 0x1e6   :  { %v3274_v2 = vmul.f32 %v612_v56, %v3022_v60 }
 0x1e8   :  { %658 = vst.msk [vmem:[%s4277_s5 + $0x48] sm:$0xff] %vm225_vm2, %v3274_v2  ;;  %v674_v5 = vpack.c.bf16 %v3274_v2, %v3274_v2 }
 0x1ea   :  { %691 = vst.msk [vmem:[%s4278_s6 + $0x24] sm:$0xf] %vm681_vm15, %v674_v5  ;;  %2435 = vmatmul.msk.f32.gmra.mxu3 %vm47_vm0, %v2417_v3  ;;  %v2512_v3 = vld [vmem:[%s4272_s0 + $0x130] sm:$0xff] }
 0x1ed   :  { %v615_v60 = vpop.f32.mrf.mxu2 }
 0x1ee   :  { %v3292_v6 = vmul.f32 %v615_v60, %v3027_v0 }
 0x1f0   :  { %659 = vst.msk [vmem:[%s4277_s5 + $0x50] sm:$0xff] %vm225_vm2, %v3292_v6  ;;  %v675_v9 = vpack.c.bf16 %v3292_v6, %v3292_v6 }
 0x1f2   :  { %692 = vst.msk [vmem:[%s4278_s6 + $0x28] sm:$0xf] %vm681_vm15, %v675_v9  ;;  %2436 = vmatmul.msk.f32.gmra.mxu3 %vm47_vm0, %v2418_v7 }
 0x1f5   :  { %v618_v0 = vpop.f32.mrf.mxu2 }
 0x1f6   :  { %v3310_v10 = vmul.f32 %v618_v0, %v3032_v4  ;;  %v2513_v0 = vld [vmem:[%s4272_s0 + $0x138] sm:$0xff] }
 0x1f8   :  { %660 = vst.msk [vmem:[%s4277_s5 + $0x58] sm:$0xff] %vm225_vm2, %v3310_v10  ;;  %v676_v15 = vpack.c.bf16 %v3310_v10, %v3310_v10 }
 0x1fa   :  { %693 = vst.msk [vmem:[%s4278_s6 + $0x2c] sm:$0xf] %vm681_vm15, %v676_v15  ;;  %2437 = vmatmul.msk.f32.gmra.mxu3 %vm47_vm0, %v2419_v13 }
 0x1fd   :  { %v621_v4 = vpop.f32.mrf.mxu2 }
 0x1fe   :  { %v3331_v19 = vmul.f32 %v621_v4, %v3037_v8 }
 0x200   :  { %661 = vst.msk [vmem:[%s4277_s5 + $0x60] sm:$0xff] %vm225_vm2, %v3331_v19  ;;  %v677_v23 = vpack.c.bf16 %v3331_v19, %v3331_v19 }
 0x202   :  { %694 = vst.msk [vmem:[%s4278_s6 + $0x30] sm:$0xf] %vm681_vm15, %v677_v23  ;;  %2438 = vmatmul.msk.f32.gmra.mxu3 %vm47_vm0, %v2420_v21  ;;  %v2514_v21 = vld [vmem:[%s4272_s0 + $0x140] sm:$0xff] }
 0x205   :  { %v624_v8 = vpop.f32.mrf.mxu2 }
 0x206   :  { %v3349_v25 = vmul.f32 %v624_v8, %v3042_v12 }
 0x208   :  { %662 = vst.msk [vmem:[%s4277_s5 + $0x68] sm:$0xff] %vm225_vm2, %v3349_v25  ;;  %v678_v14 = vpack.c.bf16 %v3349_v25, %v3349_v25 }
 0x20a   :  { %695 = vst.msk [vmem:[%s4278_s6 + $0x34] sm:$0xf] %vm681_vm15, %v678_v14  ;;  %2439 = vmatmul.msk.f32.gmra.mxu3 %vm47_vm0, %v2421_v27 }
 0x20d   :  { %v627_v12 = vpop.f32.mrf.mxu3 }
 0x20e   :  { %v3367_v29 = vmul.f32 %v627_v12, %v3047_v20  ;;  %v2515_v12 = vld [vmem:[%s4272_s0 + $0x148] sm:$0xff] }
 0x210   :  { %663 = vst.msk [vmem:[%s4277_s5 + $0x70] sm:$0xff] %vm225_vm2, %v3367_v29  ;;  %v679_v31 = vpack.c.bf16 %v3367_v29, %v3367_v29 }
 0x212   :  { %696 = vst.msk [vmem:[%s4278_s6 + $0x38] sm:$0xf] %vm681_vm15, %v679_v31  ;;  %2440 = vmatmul.msk.f32.gmra.mxu3 %vm47_vm0, %v2422_v30 }
 0x215   :  { %v630_v20 = vpop.f32.mrf.mxu3 }
 0x216   :  { %v3385_v33 = vmul.f32 %v630_v20, %v3069_v26 }
 0x218   :  { %664 = vst.msk [vmem:[%s4277_s5 + $0x78] sm:$0xff] %vm225_vm2, %v3385_v33  ;;  %v680_v35 = vpack.c.bf16 %v3385_v33, %v3385_v33  ;;  %2623 = vmatpush.xpose.msk.msrb.mxu3 %vm225_vm2, %v3385_v33 }
 0x21a   :  { %697 = vst.msk [vmem:[%s4278_s6 + $0x3c] sm:$0xf] %vm681_vm15, %v680_v35  ;;  %2524 = vmatmul.msk.f32.vlgmr.msra.gmra.mxu3 %vm47_vm0, %v2506_v34  ;;  %v2516_v35 = vld [vmem:[%s4272_s0 + $0x150] sm:$0xff] }
 0x21c   :  { %2624 = vmatpush.xpose.msk.msrb.mxu3 %vm225_vm2, %v3367_v29 }
 0x21d   :  { %v783_v26 = vpop.f32.mrf.mxu3 }
 0x21e   :  { %vm831_vm1 = vcmp.gt.f32.partialorder %v783_v26, 0.0  ;;  %v847_v24 = vmul.f32 0.2, %v783_v26 }
 0x220   :  { %v3409_v38 = vsel %vm831_vm1, %v783_v26, %v847_v24  ;;  %2625 = vmatpush.xpose.msk.msrb.mxu3 %vm225_vm2, %v3349_v25 }
 0x221   :  { %v879_v28 = vmul.f32 %v3409_v38, %v3409_v38 }
 0x222   :  { %2525 = vmatmul.msk.f32.gmra.mxu3 %vm47_vm0, %v2507_v22 }
 0x223   :  { %2441 = vmatmul.msk.f32.vlgmr.msrb.gmra.mxu2 %vm225_vm2, %v879_v28 }
 0x224   :  { %2626 = vmatpush.xpose.msk.msrb.mxu3 %vm225_vm2, %v3331_v19 }
 0x225   :  { %v786_v39 = vpop.f32.mrf.mxu3 }
 0x226   :  { %vm832_vm4 = vcmp.gt.f32.partialorder %v786_v39, 0.0  ;;  %v848_v32 = vmul.f32 0.2, %v786_v39 }
 0x228   :  { %2627 = vmatpush.xpose.msk.msrb.mxu3 %vm225_vm2, %v3310_v10  ;;  %v3424_v18 = vsel %vm832_vm4, %v786_v39, %v848_v32  ;;  %v2517_v39 = vld [vmem:[%s4272_s0 + $0x158] sm:$0xff] }
 0x229   :  { %v880_v43 = vmul.f32 %v3424_v18, %v3424_v18 }
 0x22a   :  { %2526 = vmatmul.msk.f32.gmra.mxu3 %vm47_vm0, %v2508_v41 }
 0x22b   :  { %2442 = vmatmul.msk.f32.gmra.mxu2 %vm225_vm2, %v880_v43 }
 0x22c   :  { %2628 = vmatpush.xpose.msk.msrb.mxu3 %vm225_vm2, %v3292_v6 }
 0x22d   :  { %v789_v36 = vpop.f32.mrf.mxu3 }
 0x22e   :  { %vm833_vm5 = vcmp.gt.f32.partialorder %v789_v36, 0.0  ;;  %v849_v45 = vmul.f32 0.2, %v789_v36 }
 0x230   :  { %2629 = vmatpush.xpose.msk.msrb.mxu3 %vm225_vm2, %v3274_v2  ;;  %v3437_v49 = vsel %vm833_vm5, %v789_v36, %v849_v45  ;;  %v2518_v45 = vld [vmem:[%s4272_s0 + $0x160] sm:$0xff] }
 0x231   :  { %v881_v40 = vmul.f32 %v3437_v49, %v3437_v49 }
 0x232   :  { %2527 = vmatmul.msk.f32.gmra.mxu3 %vm47_vm0, %v2509_v47 }
 0x233   :  { %2443 = vmatmul.msk.f32.gmra.mxu2 %vm225_vm2, %v881_v40 }
 0x234   :  { %2630 = vmatpush.xpose.msk.msrb.mxu3 %vm225_vm2, %v3256_v62 }
 0x235   :  { %v792_v51 = vpop.f32.mrf.mxu3 }
 0x236   :  { %vm834_vm6 = vcmp.gt.f32.partialorder %v792_v51, 0.0  ;;  %v850_v53 = vmul.f32 0.2, %v792_v51 }
 0x238   :  { %2631 = vmatpush.xpose.msk.msrb.mxu3 %vm225_vm2, %v3238_v58  ;;  %v3450_v55 = vsel %vm834_vm6, %v792_v51, %v850_v53 }
 0x239   :  { %v882_v57 = vmul.f32 %v3450_v55, %v3450_v55 }
 0x23a   :  { %2528 = vmatmul.msk.f32.gmra.mxu3 %vm47_vm0, %v2510_v44  ;;  %v2519_v44 = vld [vmem:[%s4272_s0 + $0x168] sm:$0xff] }
 0x23b   :  { %2444 = vmatmul.msk.f32.gmra.mxu2 %vm225_vm2, %v882_v57 }
 0x23c   :  { %2632 = vmatpush.xpose.msk.msrb.mxu3 %vm225_vm2, %v3220_v54 }
 0x23d   :  { %v795_v48 = vpop.f32.mrf.mxu3 }
 0x23e   :  { %vm835_vm8 = vcmp.gt.f32.partialorder %v795_v48, 0.0  ;;  %v851_v59 = vmul.f32 0.2, %v795_v48 }
 0x240   :  { %2633 = vmatpush.xpose.msk.msrb.mxu3 %vm225_vm2, %v3202_v50  ;;  %v3463_v52 = vsel %vm835_vm8, %v795_v48, %v851_v59 }
 0x241   :  { %v883_v63 = vmul.f32 %v3463_v52, %v3463_v52 }
 0x242   :  { %2529 = vmatmul.msk.f32.gmra.mxu3 %vm47_vm0, %v2511_v61 }
 0x243   :  { %2445 = vmatmul.msk.f32.gmra.mxu2 %vm225_vm2, %v883_v63  ;;  %v2520_v63 = vld [vmem:[%s4272_s0 + $0x170] sm:$0xff] }
 0x244   :  { %2634 = vmatpush.xpose.msk.msrb.mxu3 %vm225_vm2, %v3184_v46 }
 0x245   :  { %v798_v1 = vpop.f32.mrf.mxu3 }
 0x246   :  { %vm836_vm9 = vcmp.gt.f32.partialorder %v798_v1, 0.0  ;;  %v852_v56 = vmul.f32 0.2, %v798_v1 }
 0x248   :  { %2635 = vmatpush.xpose.msk.msrb.mxu3 %vm225_vm2, %v3163_v42  ;;  %v3476_v5 = vsel %vm836_vm9, %v798_v1, %v852_v56 }
 0x249   :  { %v884_v60 = vmul.f32 %v3476_v5, %v3476_v5 }
 0x24a   :  { %2530 = vmatmul.msk.f32.gmra.mxu3 %vm47_vm0, %v2512_v3 }
 0x24b   :  { %2446 = vmatmul.msk.f32.gmra.mxu2 %vm225_vm2, %v884_v60 }
 0x24c   :  { %2636 = vmatpush.xpose.msk.msrb.mxu3 %vm225_vm2, %v3144_v17 }
 0x24d   :  { %v801_v7 = vpop.f32.mrf.mxu3 }
 0x24e   :  { %vm837_vm3 = vcmp.gt.f32.partialorder %v801_v7, 0.0  ;;  %v853_v9 = vmul.f32 0.2, %v801_v7 }
 0x250   :  { %2637 = vmatpush.xpose.msk.msrb.mxu3 %vm225_vm2, %v3126_v37  ;;  %v3489_v11 = vsel %vm837_vm3, %v801_v7, %v853_v9  ;;  %v2521_v7 = vld [vmem:[%s4272_s0 + $0x178] sm:$0xff] }
 0x251   :  { %v885_v13 = vmul.f32 %v3489_v11, %v3489_v11 }
 0x252   :  { %2531 = vmatmul.msk.f32.gmra.mxu3 %vm47_vm0, %v2513_v0 }
 0x253   :  { %2447 = vmatmul.msk.f32.gmra.mxu2 %vm225_vm2, %v885_v13 }
 0x254   :  { %2638 = vmatpush.xpose.msk.msrb.mxu3 %vm225_vm2, %v3108_v16 }
 0x255   :  { %v804_v15 = vpop.f32.mrf.mxu3 }
 0x256   :  { %vm838_vm10 = vcmp.gt.f32.partialorder %v804_v15, 0.0  ;;  %v854_v4 = vmul.f32 0.2, %v804_v15 }
 0x258   :  { %v3500_v23 = vsel %vm838_vm10, %v804_v15, %v854_v4 }
 0x259   :  { %v886_v8 = vmul.f32 %v3500_v23, %v3500_v23 }
 0x25a   :  { %2532 = vmatmul.msk.f32.gmra.mxu3 %vm47_vm0, %v2514_v21 }
 0x25b   :  { %2448 = vmatmul.msk.f32.gmra.mxu2 %vm225_vm2, %v886_v8 }
 0x25d   :  { %v807_v27 = vpop.f32.mrf.mxu3 }
 0x25e   :  { %vm839_vm11 = vcmp.gt.f32.partialorder %v807_v27, 0.0  ;;  %v855_v14 = vmul.f32 0.2, %v807_v27 }
 0x260   :  { %v3509_v30 = vsel %vm839_vm11, %v807_v27, %v855_v14 }
 0x261   :  { %v887_v31 = vmul.f32 %v3509_v30, %v3509_v30 }
 0x262   :  { %2533 = vmatmul.msk.f32.gmra.mxu3 %vm47_vm0, %v2515_v12 }
 0x263   :  { %2449 = vmatmul.msk.f32.gmra.mxu2 %vm225_vm2, %v887_v31 }
 0x265   :  { %v810_v20 = vpop.f32.mrf.mxu3 }
 0x266   :  { %vm840_vm12 = vcmp.gt.f32.partialorder %v810_v20, 0.0  ;;  %v856_v34 = vmul.f32 0.2, %v810_v20 }
 0x268   :  { %v3518_v26 = vsel %vm840_vm12, %v810_v20, %v856_v34 }
 0x269   :  { %v888_v24 = vmul.f32 %v3518_v26, %v3518_v26 }
 0x26a   :  { %2534 = vmatmul.msk.f32.gmra.mxu3 %vm47_vm0, %v2516_v35 }
 0x26b   :  { %2450 = vmatmul.msk.f32.gmra.mxu2 %vm225_vm2, %v888_v24 }
 0x26d   :  { %v813_v22 = vpop.f32.mrf.mxu3 }
 0x26e   :  { %vm841_vm13 = vcmp.gt.f32.partialorder %v813_v22, 0.0  ;;  %v857_v28 = vmul.f32 0.2, %v813_v22 }
 0x270   :  { %v3527_v32 = vsel %vm841_vm13, %v813_v22, %v857_v28 }
 0x271   :  { %v889_v41 = vmul.f32 %v3527_v32, %v3527_v32 }
 0x272   :  { %2535 = vmatmul.msk.f32.gmra.mxu3 %vm47_vm0, %v2517_v39 }
 0x273   :  { %2451 = vmatmul.msk.f32.gmra.mxu2 %vm225_vm2, %v889_v41 }
 0x275   :  { %v816_v43 = vpop.f32.mrf.mxu3 }
 0x276   :  { %vm842_vm14 = vcmp.gt.f32.partialorder %v816_v43, 0.0  ;;  %v858_v36 = vmul.f32 0.2, %v816_v43 }
 0x278   :  { %v3536_v47 = vsel %vm842_vm14, %v816_v43, %v858_v36 }
 0x279   :  { %v890_v40 = vmul.f32 %v3536_v47, %v3536_v47 }
 0x27a   :  { %2536 = vmatmul.msk.f32.gmra.mxu3 %vm47_vm0, %v2518_v45 }
 0x27b   :  { %2452 = vmatmul.msk.f32.gmra.mxu2 %vm225_vm2, %v890_v40 }
 0x27d   :  { %v819_v51 = vpop.f32.mrf.mxu3 }
 0x27e   :  { %vm843_vm1 = vcmp.gt.f32.partialorder %v819_v51, 0.0  ;;  %v859_v53 = vmul.f32 0.2, %v819_v51 }
 0x280   :  { %v3545_v57 = vsel %vm843_vm1, %v819_v51, %v859_v53 }
 0x281   :  { %v891_v48 = vmul.f32 %v3545_v57, %v3545_v57 }
 0x282   :  { %2537 = vmatmul.msk.f32.gmra.mxu3 %vm47_vm0, %v2519_v44 }
 0x283   :  { %2453 = vmatmul.msk.f32.gmra.mxu2 %vm225_vm2, %v891_v48 }
 0x285   :  { %v822_v59 = vpop.f32.mrf.mxu3 }
 0x286   :  { %vm844_vm4 = vcmp.gt.f32.partialorder %v822_v59, 0.0  ;;  %v860_v61 = vmul.f32 0.2, %v822_v59 }
 0x288   :  { %v3554_v1 = vsel %vm844_vm4, %v822_v59, %v860_v61 }
 0x289   :  { %v892_v56 = vmul.f32 %v3554_v1, %v3554_v1 }
 0x28a   :  { %2538 = vmatmul.msk.f32.gmra.mxu3 %vm47_vm0, %v2520_v63 }
 0x28b   :  { %2454 = vmatmul.msk.f32.gmra.mxu2 %vm225_vm2, %v892_v56 }
 0x28d   :  { %v825_v3 = vpop.f32.mrf.mxu3 }
 0x28e   :  { %vm845_vm5 = vcmp.gt.f32.partialorder %v825_v3, 0.0  ;;  %v861_v60 = vmul.f32 0.2, %v825_v3 }
 0x290   :  { %v3563_v9 = vsel %vm845_vm5, %v825_v3, %v861_v60 }
 0x291   :  { %v893_v0 = vmul.f32 %v3563_v9, %v3563_v9 }
 0x292   :  { %2539 = vmatmul.msk.f32.gmra.mxu3 %vm47_vm0, %v2521_v7 }
 0x293   :  { %2455 = vmatmul.msk.f32.gmra.mxu2 %vm225_vm2, %v893_v0 }
 0x295   :  { %v828_v13 = vpop.f32.mrf.mxu3 }
 0x296   :  { %vm846_vm6 = vcmp.gt.f32.partialorder %v828_v13, 0.0  ;;  %v862_v15 = vmul.f32 0.2, %v828_v13 }
 0x298   :  { %v3569_v4 = vsel %vm846_vm6, %v828_v13, %v862_v15 }
 0x299   :  { %v894_v21 = vmul.f32 %v3569_v4, %v3569_v4 }
 0x29b   :  { %2456 = vmatmul.msk.f32.gmra.mxu2 %vm225_vm2, %v894_v21 }
 0x29d   :  { %v1448_v8 = vpop.f32.mrf.mxu3 }
 0x29e   :  { %vm1496_vm8 = vcmp.gt.f32.partialorder %v1448_v8, 0.0  ;;  %v1512_v27 = vmul.f32 0.2, %v1448_v8 }
 0x2a0   :  { %v3574_v14 = vsel %vm1496_vm8, %v1448_v8, %v1512_v27 }
 0x2a1   :  { %v1544_v12 = vmul.f32 %v3574_v14, %v3574_v14 }
 0x2a3   :  { %2540 = vmatmul.msk.f32.vlgmr.msra.gmra.mxu1 %vm225_vm2, %v1544_v12 }
 0x2a5   :  { %v1451_v31 = vpop.f32.mrf.mxu3 }
 0x2a6   :  { %vm1497_vm0 = vcmp.gt.f32.partialorder %v1451_v31, 0.0  ;;  %v1513_v20 = vmul.f32 0.2, %v1451_v31  ;;  %v960_v34 = vpop.f32.mrf.mxu2 }
 0x2a7   :  { %v1008_v35 = vmax.f32 %v960_v34, 1e-24 }
 0x2a8   :  { %v3579_v24 = vsel %vm1497_vm0, %v1451_v31, %v1513_v20 }
 0x2a9   :  { %2750 = vrsqrt.f32 %v1008_v35  ;;  %v1545_v22 = vmul.f32 %v3579_v24, %v3579_v24  ;;  %vm1030_vm11 = vweird.f32 %v1008_v35 }
 0x2ab   :  { %2541 = vmatmul.msk.f32.gmra.mxu1 %vm225_vm2, %v1545_v22 }
 0x2ad   :  { %v1454_v28 = vpop.f32.mrf.mxu3 }
 0x2ae   :  { %vm1498_vm9 = vcmp.gt.f32.partialorder %v1454_v28, 0.0  ;;  %v1514_v39 = vmul.f32 0.2, %v1454_v28  ;;  %v963_v41 = vpop.f32.mrf.mxu2 }
 0x2af   :  { %v2751_v43 = vpop.eup %2750  ;;  %v1009_v36 = vmax.f32 %v963_v41, 1e-24 }
 0x2b0   :  { %v1025_v45 = vmul.f32 %v2751_v43, %v1008_v35  ;;  %v3584_v40 = vsel %vm1498_vm9, %v1454_v28, %v1514_v39  ;;  %vm1031_vm3 = vweird.f32 %v2751_v43 }
 0x2b1   :  { %2752 = vrsqrt.f32 %v1009_v36  ;;  %v1546_v51 = vmul.f32 %v3584_v40, %v3584_v40  ;;  %vm1032_vm12 = vmor %vm1030_vm11, %vm1031_vm3  ;;  %vm1040_vm1 = vweird.f32 %v1009_v36 }
 0x2b2   :  { %v1026_v53 = vmul.f32 %v2751_v43, %v1025_v45 }
 0x2b3   :  { %2542 = vmatmul.msk.f32.gmra.mxu1 %vm225_vm2, %v1546_v51 }
 0x2b4   :  { %v1027_v44 = vmul.f32 0.5, %v1026_v53 }
 0x2b5   :  { %v1457_v48 = vpop.f32.mrf.mxu3 }
 0x2b6   :  { %v1028_v59 = vsub.f32 1.5, %v1027_v44  ;;  %vm1499_vm10 = vcmp.gt.f32.partialorder %v1457_v48, 0.0  ;;  %v1515_v61 = vmul.f32 0.2, %v1457_v48  ;;  %v966_v63 = vpop.f32.mrf.mxu2 }
 0x2b7   :  { %v2753_v56 = vpop.eup %2752  ;;  %v1010_v3 = vmax.f32 %v966_v63, 1e-24 }
 0x2b8   :  { %v1035_v60 = vmul.f32 %v2753_v56, %v1009_v36  ;;  %v3589_v7 = vsel %vm1499_vm10, %v1457_v48, %v1515_v61  ;;  %v1029_v0 = vmul.f32 %v2751_v43, %v1028_v59  ;;  %vm1041_vm14 = vweird.f32 %v2753_v56 }
 0x2b9   :  { %2754 = vrsqrt.f32 %v1010_v3  ;;  %v1547_v13 = vmul.f32 %v3589_v7, %v3589_v7  ;;  %vm1042_vm4 = vmor %vm1040_vm1, %vm1041_vm14  ;;  %vm1050_vm8 = vweird.f32 %v1010_v3 }
 0x2ba   :  { %v1036_v15 = vmul.f32 %v2753_v56, %v1035_v60  ;;  %v1033_v21 = vsel %vm1032_vm12, %v2751_v43, %v1029_v0 }
 0x2bb   :  { %2458 = vmatmul.msk.f32.vlgmr.msra.gmra.mxu0 %vm515_vm7, %v1033_v21  ;;  %2543 = vmatmul.msk.f32.gmra.mxu1 %vm225_vm2, %v1547_v13 }
 0x2bc   :  { %v1037_v8 = vmul.f32 0.5, %v1036_v15 }
 0x2bd   :  { %v1460_v27 = vpop.f32.mrf.mxu3 }
 0x2be   :  { %vm1500_vm13 = vcmp.gt.f32.partialorder %v1460_v27, 0.0  ;;  %v1516_v12 = vmul.f32 0.2, %v1460_v27  ;;  %v969_v31 = vpop.f32.mrf.mxu2  ;;  %v1038_v20 = vsub.f32 1.5, %v1037_v8 }
 0x2bf   :  { %v2755_v34 = vpop.eup %2754  ;;  %v1011_v35 = vmax.f32 %v969_v31, 1e-24 }
 0x2c0   :  { %v1045_v22 = vmul.f32 %v2755_v34, %v1010_v3  ;;  %v3595_v28 = vsel %vm1500_vm13, %v1460_v27, %v1516_v12  ;;  %v1039_v39 = vmul.f32 %v2753_v56, %v1038_v20  ;;  %vm1051_vm6 = vweird.f32 %v2755_v34 }
 0x2c1   :  { %2756 = vrsqrt.f32 %v1011_v35  ;;  %v1548_v41 = vmul.f32 %v3595_v28, %v3595_v28  ;;  %vm1052_vm0 = vmor %vm1050_vm8, %vm1051_vm6  ;;  %vm1060_vm10 = vweird.f32 %v1011_v35 }
 0x2c2   :  { %v1046_v43 = vmul.f32 %v2755_v34, %v1045_v22  ;;  %v1043_v45 = vsel %vm1042_vm4, %v2753_v56, %v1039_v39 }
 0x2c3   :  { %2459 = vmatmul.msk.f32.gmra.mxu0 %vm515_vm7, %v1043_v45  ;;  %2544 = vmatmul.msk.f32.gmra.mxu1 %vm225_vm2, %v1548_v41 }
 0x2c4   :  { %v1047_v51 = vmul.f32 0.5, %v1046_v43 }
 0x2c5   :  { %v1463_v53 = vpop.f32.mrf.mxu3 }
 0x2c6   :  { %vm1501_vm5 = vcmp.gt.f32.partialorder %v1463_v53, 0.0  ;;  %v1517_v44 = vmul.f32 0.2, %v1463_v53  ;;  %v972_v48 = vpop.f32.mrf.mxu2  ;;  %v1048_v59 = vsub.f32 1.5, %v1047_v51 }
 0x2c7   :  { %v2757_v61 = vpop.eup %2756  ;;  %v1012_v36 = vmax.f32 %v972_v48, 1e-24 }
 0x2c8   :  { %v1055_v63 = vmul.f32 %v2757_v61, %v1011_v35  ;;  %v3601_v60 = vsel %vm1501_vm5, %v1463_v53, %v1517_v44  ;;  %v1049_v0 = vmul.f32 %v2755_v34, %v1048_v59  ;;  %vm1061_vm3 = vweird.f32 %v2757_v61 }
 0x2c9   :  { %2758 = vrsqrt.f32 %v1012_v36  ;;  %v1549_v56 = vmul.f32 %v3601_v60, %v3601_v60  ;;  %vm1062_vm11 = vmor %vm1060_vm10, %vm1061_vm3  ;;  %vm1070_vm14 = vweird.f32 %v1012_v36 }
 0x2ca   :  { %v1056_v13 = vmul.f32 %v2757_v61, %v1055_v63  ;;  %v1053_v15 = vsel %vm1052_vm0, %v2755_v34, %v1049_v0 }
 0x2cb   :  { %2460 = vmatmul.msk.f32.gmra.mxu0 %vm515_vm7, %v1053_v15  ;;  %2545 = vmatmul.msk.f32.gmra.mxu1 %vm225_vm2, %v1549_v56 }
 0x2cc   :  { %v1057_v21 = vmul.f32 0.5, %v1056_v13 }
 0x2cd   :  { %v1466_v8 = vpop.f32.mrf.mxu3 }
 0x2ce   :  { %vm1502_vm9 = vcmp.gt.f32.partialorder %v1466_v8, 0.0  ;;  %v1518_v27 = vmul.f32 0.2, %v1466_v8  ;;  %v975_v12 = vpop.f32.mrf.mxu2  ;;  %v1058_v31 = vsub.f32 1.5, %v1057_v21 }
 0x2cf   :  { %v2759_v20 = vpop.eup %2758  ;;  %v1013_v3 = vmax.f32 %v975_v12, 1e-24 }
 0x2d0   :  { %v1065_v22 = vmul.f32 %v2759_v20, %v1012_v36  ;;  %v3607_v39 = vsel %vm1502_vm9, %v1466_v8, %v1518_v27  ;;  %v1059_v41 = vmul.f32 %v2757_v61, %v1058_v31  ;;  %vm1071_vm13 = vweird.f32 %v2759_v20 }
 0x2d1   :  { %2760 = vrsqrt.f32 %v1013_v3  ;;  %v1550_v34 = vmul.f32 %v3607_v39, %v3607_v39  ;;  %vm1072_vm1 = vmor %vm1070_vm14, %vm1071_vm13  ;;  %vm1080_vm6 = vweird.f32 %v1013_v3 }
 0x2d2   :  { %v1066_v43 = vmul.f32 %v2759_v20, %v1065_v22  ;;  %v1063_v45 = vsel %vm1062_vm11, %v2757_v61, %v1059_v41 }
 0x2d3   :  { %2461 = vmatmul.msk.f32.gmra.mxu0 %vm515_vm7, %v1063_v45  ;;  %2546 = vmatmul.msk.f32.gmra.mxu1 %vm225_vm2, %v1550_v34 }
 0x2d4   :  { %v1067_v51 = vmul.f32 0.5, %v1066_v43 }
 0x2d5   :  { %v1469_v53 = vpop.f32.mrf.mxu3 }
 0x2d6   :  { %vm1503_vm12 = vcmp.gt.f32.partialorder %v1469_v53, 0.0  ;;  %v1519_v44 = vmul.f32 0.2, %v1469_v53  ;;  %v978_v48 = vpop.f32.mrf.mxu2  ;;  %v1068_v59 = vsub.f32 1.5, %v1067_v51 }
 0x2d7   :  { %v2761_v63 = vpop.eup %2760  ;;  %v1014_v35 = vmax.f32 %v978_v48, 1e-24 }
 0x2d8   :  { %v1075_v0 = vmul.f32 %v2761_v63, %v1013_v3  ;;  %v3613_v56 = vsel %vm1503_vm12, %v1469_v53, %v1519_v44  ;;  %v1069_v13 = vmul.f32 %v2759_v20, %v1068_v59  ;;  %vm1081_vm5 = vweird.f32 %v2761_v63 }
 0x2d9   :  { %v1551_v61 = vmul.f32 %v3613_v56, %v3613_v56  ;;  %2762 = vrsqrt.f32 %v1014_v35  ;;  %vm1082_vm8 = vmor %vm1080_vm6, %vm1081_vm5  ;;  %vm1090_vm3 = vweird.f32 %v1014_v35 }
 0x2da   :  { %v1076_v15 = vmul.f32 %v2761_v63, %v1075_v0  ;;  %v1073_v21 = vsel %vm1072_vm1, %v2759_v20, %v1069_v13 }
 0x2db   :  { %2462 = vmatmul.msk.f32.gmra.mxu0 %vm515_vm7, %v1073_v21  ;;  %2547 = vmatmul.msk.f32.gmra.mxu1 %vm225_vm2, %v1551_v61 }
 0x2dc   :  { %v1077_v8 = vmul.f32 0.5, %v1076_v15 }
 0x2dd   :  { %v1472_v27 = vpop.f32.mrf.mxu3 }
 0x2de   :  { %vm1504_vm4 = vcmp.gt.f32.partialorder %v1472_v27, 0.0  ;;  %v1520_v12 = vmul.f32 0.2, %v1472_v27  ;;  %v981_v31 = vpop.f32.mrf.mxu2  ;;  %v1078_v22 = vsub.f32 1.5, %v1077_v8 }
 0x2df   :  { %v2763_v41 = vpop.eup %2762  ;;  %v1015_v36 = vmax.f32 %v981_v31, 1e-24 }
 0x2e0   :  { %v1085_v34 = vmul.f32 %v2763_v41, %v1014_v35  ;;  %v3619_v43 = vsel %vm1504_vm4, %v1472_v27, %v1520_v12  ;;  %v1079_v45 = vmul.f32 %v2761_v63, %v1078_v22  ;;  %vm1091_vm9 = vweird.f32 %v2763_v41 }
 0x2e1   :  { %v1552_v20 = vmul.f32 %v3619_v43, %v3619_v43  ;;  %2764 = vrsqrt.f32 %v1015_v36  ;;  %vm1092_vm10 = vmor %vm1090_vm3, %vm1091_vm9  ;;  %vm1100_vm13 = vweird.f32 %v1015_v36 }
 0x2e2   :  { %v1086_v51 = vmul.f32 %v2763_v41, %v1085_v34  ;;  %v1083_v53 = vsel %vm1082_vm8, %v2761_v63, %v1079_v45 }
 0x2e3   :  { %2463 = vmatmul.msk.f32.gmra.mxu0 %vm515_vm7, %v1083_v53  ;;  %2548 = vmatmul.msk.f32.gmra.mxu1 %vm225_vm2, %v1552_v20 }
 0x2e4   :  { %v1087_v44 = vmul.f32 0.5, %v1086_v51 }
 0x2e5   :  { %v1475_v48 = vpop.f32.mrf.mxu3 }
 0x2e6   :  { %v1088_v59 = vsub.f32 1.5, %v1087_v44  ;;  %vm1505_vm0 = vcmp.gt.f32.partialorder %v1475_v48, 0.0  ;;  %v1521_v0 = vmul.f32 0.2, %v1475_v48  ;;  %v984_v13 = vpop.f32.mrf.mxu2 }
 0x2e7   :  { %v2765_v61 = vpop.eup %2764  ;;  %v1016_v3 = vmax.f32 %v984_v13, 1e-24 }
 0x2e8   :  { %v1095_v15 = vmul.f32 %v2765_v61, %v1015_v36  ;;  %v3625_v21 = vsel %vm1505_vm0, %v1475_v48, %v1521_v0  ;;  %v1089_v8 = vmul.f32 %v2763_v41, %v1088_v59  ;;  %vm1101_vm12 = vweird.f32 %v2765_v61 }
 0x2e9   :  { %v1553_v63 = vmul.f32 %v3625_v21, %v3625_v21  ;;  %2766 = vrsqrt.f32 %v1016_v3  ;;  %vm1102_vm14 = vmor %vm1100_vm13, %vm1101_vm12  ;;  %vm1110_vm5 = vweird.f32 %v1016_v3 }
 0x2ea   :  { %v1096_v27 = vmul.f32 %v2765_v61, %v1095_v15  ;;  %v1093_v12 = vsel %vm1092_vm10, %v2763_v41, %v1089_v8 }
 0x2eb   :  { %2464 = vmatmul.msk.f32.gmra.mxu0 %vm515_vm7, %v1093_v12  ;;  %2549 = vmatmul.msk.f32.gmra.mxu1 %vm225_vm2, %v1553_v63 }
 0x2ec   :  { %v1097_v31 = vmul.f32 0.5, %v1096_v27 }
 0x2ed   :  { %v1478_v22 = vpop.f32.mrf.mxu3 }
 0x2ee   :  { %v1098_v34 = vsub.f32 1.5, %v1097_v31  ;;  %vm1506_vm11 = vcmp.gt.f32.partialorder %v1478_v22, 0.0  ;;  %v1522_v35 = vmul.f32 0.2, %v1478_v22  ;;  %v987_v45 = vpop.f32.mrf.mxu2 }
 0x2ef   :  { %v2767_v20 = vpop.eup %2766  ;;  %v1017_v51 = vmax.f32 %v987_v45, 1e-24 }
 0x2f0   :  { %v1105_v53 = vmul.f32 %v2767_v20, %v1016_v3  ;;  %v3631_v44 = vsel %vm1506_vm11, %v1478_v22, %v1522_v35  ;;  %v1099_v48 = vmul.f32 %v2765_v61, %v1098_v34  ;;  %vm1111_vm4 = vweird.f32 %v2767_v20 }
 0x2f1   :  { %v1554_v41 = vmul.f32 %v3631_v44, %v3631_v44  ;;  %2768 = vrsqrt.f32 %v1017_v51  ;;  %vm1112_vm6 = vmor %vm1110_vm5, %vm1111_vm4  ;;  %vm1120_vm9 = vweird.f32 %v1017_v51 }
 0x2f2   :  { %v1106_v59 = vmul.f32 %v2767_v20, %v1105_v53  ;;  %v1103_v0 = vsel %vm1102_vm14, %v2765_v61, %v1099_v48 }
 0x2f3   :  { %2465 = vmatmul.msk.f32.gmra.mxu0 %vm515_vm7, %v1103_v0  ;;  %2550 = vmatmul.msk.f32.gmra.mxu1 %vm225_vm2, %v1554_v41 }
 0x2f4   :  { %v1107_v13 = vmul.f32 0.5, %v1106_v59 }
 0x2f5   :  { %v1481_v15 = vpop.f32.mrf.mxu3 }
 0x2f6   :  { %v1108_v8 = vsub.f32 1.5, %v1107_v13  ;;  %vm1507_vm1 = vcmp.gt.f32.partialorder %v1481_v15, 0.0  ;;  %v1523_v36 = vmul.f32 0.2, %v1481_v15  ;;  %v990_v63 = vpop.f32.mrf.mxu2 }
 0x2f7   :  { %v2769_v27 = vpop.eup %2768  ;;  %v1018_v12 = vmax.f32 %v990_v63, 1e-24 }
 0x2f8   :  { %v1115_v31 = vmul.f32 %v2769_v27, %v1017_v51  ;;  %v3637_v22 = vsel %vm1507_vm1, %v1481_v15, %v1523_v36  ;;  %v1109_v34 = vmul.f32 %v2767_v20, %v1108_v8  ;;  %vm1121_vm0 = vweird.f32 %v2769_v27 }
 0x2f9   :  { %v1555_v61 = vmul.f32 %v3637_v22, %v3637_v22  ;;  %2770 = vrsqrt.f32 %v1018_v12  ;;  %vm1122_vm3 = vmor %vm1120_vm9, %vm1121_vm0  ;;  %vm1130_vm12 = vweird.f32 %v1018_v12 }
 0x2fa   :  { %v1116_v35 = vmul.f32 %v2769_v27, %v1115_v31  ;;  %v1113_v45 = vsel %vm1112_vm6, %v2767_v20, %v1109_v34 }
 0x2fb   :  { %2466 = vmatmul.msk.f32.gmra.mxu0 %vm515_vm7, %v1113_v45  ;;  %2551 = vmatmul.msk.f32.gmra.mxu1 %vm225_vm2, %v1555_v61 }
 0x2fc   :  { %v1117_v53 = vmul.f32 0.5, %v1116_v35 }
 0x2fd   :  { %v1484_v48 = vpop.f32.mrf.mxu3 }
 0x2fe   :  { %v1118_v41 = vsub.f32 1.5, %v1117_v53  ;;  %vm1508_vm8 = vcmp.gt.f32.partialorder %v1484_v48, 0.0  ;;  %v1524_v3 = vmul.f32 0.2, %v1484_v48  ;;  %v993_v59 = vpop.f32.mrf.mxu2 }
 0x2ff   :  { %v2771_v0 = vpop.eup %2770  ;;  %v1019_v13 = vmax.f32 %v993_v59, 1e-24 }
 0x300   :  { %v1125_v15 = vmul.f32 %v2771_v0, %v1018_v12  ;;  %v3643_v8 = vsel %vm1508_vm8, %v1484_v48, %v1524_v3  ;;  %v1119_v36 = vmul.f32 %v2769_v27, %v1118_v41  ;;  %vm1131_vm11 = vweird.f32 %v2771_v0 }
 0x301   :  { %v1556_v20 = vmul.f32 %v3643_v8, %v3643_v8  ;;  %2772 = vrsqrt.f32 %v1019_v13  ;;  %vm1132_vm13 = vmor %vm1130_vm12, %vm1131_vm11  ;;  %vm1140_vm4 = vweird.f32 %v1019_v13 }
 0x302   :  { %v1126_v63 = vmul.f32 %v2771_v0, %v1125_v15  ;;  %v1123_v31 = vsel %vm1122_vm3, %v2769_v27, %v1119_v36 }
 0x303   :  { %2467 = vmatmul.msk.f32.gmra.mxu0 %vm515_vm7, %v1123_v31  ;;  %2552 = vmatmul.msk.f32.gmra.mxu1 %vm225_vm2, %v1556_v20 }
 0x304   :  { %v1127_v34 = vmul.f32 0.5, %v1126_v63 }
 0x305   :  { %v1487_v61 = vpop.f32.mrf.mxu3 }
 0x306   :  { %v1128_v35 = vsub.f32 1.5, %v1127_v34  ;;  %vm1509_vm10 = vcmp.gt.f32.partialorder %v1487_v61, 0.0  ;;  %v1525_v51 = vmul.f32 0.2, %v1487_v61  ;;  %v996_v45 = vpop.f32.mrf.mxu2 }
 0x307   :  { %v2773_v53 = vpop.eup %2772  ;;  %v1020_v48 = vmax.f32 %v996_v45, 1e-24 }
 0x308   :  { %v1135_v41 = vmul.f32 %v2773_v53, %v1019_v13  ;;  %v3649_v3 = vsel %vm1509_vm10, %v1487_v61, %v1525_v51  ;;  %v1129_v59 = vmul.f32 %v2771_v0, %v1128_v35  ;;  %vm1141_vm1 = vweird.f32 %v2773_v53 }
 0x309   :  { %v1557_v27 = vmul.f32 %v3649_v3, %v3649_v3  ;;  %2774 = vrsqrt.f32 %v1020_v48  ;;  %vm1142_vm5 = vmor %vm1140_vm4, %vm1141_vm1  ;;  %vm1150_vm0 = vweird.f32 %v1020_v48 }
 0x30a   :  { %v1136_v15 = vmul.f32 %v2773_v53, %v1135_v41  ;;  %v1133_v36 = vsel %vm1132_vm13, %v2771_v0, %v1129_v59 }
 0x30b   :  { %2468 = vmatmul.msk.f32.gmra.mxu0 %vm515_vm7, %v1133_v36  ;;  %2553 = vmatmul.msk.f32.gmra.mxu1 %vm225_vm2, %v1557_v27 }
 0x30c   :  { %v1137_v20 = vmul.f32 0.5, %v1136_v15 }
 0x30d   :  { %v1490_v63 = vpop.f32.mrf.mxu3 }
 0x30e   :  { %v1138_v31 = vsub.f32 1.5, %v1137_v20  ;;  %vm1510_vm14 = vcmp.gt.f32.partialorder %v1490_v63, 0.0  ;;  %v1526_v12 = vmul.f32 0.2, %v1490_v63  ;;  %v999_v34 = vpop.f32.mrf.mxu2 }
 0x30f   :  { %v2775_v61 = vpop.eup %2774  ;;  %v1021_v35 = vmax.f32 %v999_v34, 1e-24 }
 0x310   :  { %v1145_v51 = vmul.f32 %v2775_v61, %v1020_v48  ;;  %v3655_v45 = vsel %vm1510_vm14, %v1490_v63, %v1526_v12  ;;  %v1139_v16 = vmul.f32 %v2773_v53, %v1138_v31  ;;  %vm1151_vm8 = vweird.f32 %v2775_v61 }
 0x311   :  { %4288 = vst [vmem:[#allocation8_spill] sm:$0xff] %v3655_v45  ;;  %v1558_v0 = vmul.f32 %v3655_v45, %v3655_v45  ;;  %2776 = vrsqrt.f32 %v1021_v35  ;;  %vm1152_vm9 = vmor %vm1150_vm0, %vm1151_vm8  ;;  %vm1160_vm10 = vweird.f32 %v1021_v35 }
 0x312   :  { %v1146_v41 = vmul.f32 %v2775_v61, %v1145_v51  ;;  %v1143_v59 = vsel %vm1142_vm5, %v2773_v53, %v1139_v16 }
 0x313   :  { %2469 = vmatmul.msk.f32.gmra.mxu0 %vm515_vm7, %v1143_v59  ;;  %2554 = vmatmul.msk.f32.gmra.mxu1 %vm225_vm2, %v1558_v0 }
 0x314   :  { %v1147_v27 = vmul.f32 0.5, %v1146_v41 }
 0x315   :  { %v1493_v15 = vpop.f32.mrf.mxu3 }
 0x316   :  { %v1148_v36 = vsub.f32 1.5, %v1147_v27  ;;  %vm1511_vm6 = vcmp.gt.f32.partialorder %v1493_v15, 0.0  ;;  %v1527_v13 = vmul.f32 0.2, %v1493_v15  ;;  %v1002_v20 = vpop.f32.mrf.mxu2 }
 0x317   :  { %v2777_v63 = vpop.eup %2776  ;;  %v1022_v31 = vmax.f32 %v1002_v20, 1e-24 }
 0x318   :  { %v1155_v12 = vmul.f32 %v2777_v63, %v1021_v35  ;;  %v3661_v34 = vsel %vm1511_vm6, %v1493_v15, %v1527_v13  ;;  %v1149_v45 = vmul.f32 %v2775_v61, %v1148_v36  ;;  %vm1161_vm3 = vweird.f32 %v2777_v63 }
 0x319   :  { %4289 = vst [vmem:[#allocation9_spill] sm:$0xff] %v3661_v34  ;;  %v1559_v16 = vmul.f32 %v3661_v34, %v3661_v34  ;;  %2778 = vrsqrt.f32 %v1022_v31  ;;  %vm1162_vm11 = vmor %vm1160_vm10, %vm1161_vm3  ;;  %vm1170_vm13 = vweird.f32 %v1022_v31 }
 0x31a   :  { %v1156_v53 = vmul.f32 %v2777_v63, %v1155_v12  ;;  %v1153_v51 = vsel %vm1152_vm9, %v2775_v61, %v1149_v45 }
 0x31b   :  { %2470 = vmatmul.msk.f32.gmra.mxu0 %vm515_vm7, %v1153_v51  ;;  %2555 = vmatmul.msk.f32.gmra.mxu1 %vm225_vm2, %v1559_v16 }
 0x31c   :  { %v1157_v0 = vmul.f32 0.5, %v1156_v53 }
 0x31e   :  { %v1158_v41 = vsub.f32 1.5, %v1157_v0  ;;  %v1005_v59 = vpop.f32.mrf.mxu2 }
 0x31f   :  { %v2779_v48 = vpop.eup %2778  ;;  %v1023_v27 = vmax.f32 %v1005_v59, 1e-24 }
 0x320   :  { %v1165_v15 = vmul.f32 %v2779_v48, %v1022_v31  ;;  %v1625_v36 = vpop.f32.mrf.mxu1  ;;  %v1159_v13 = vmul.f32 %v2777_v63, %v1158_v41  ;;  %vm1171_vm12 = vweird.f32 %v2779_v48 }
 0x321   :  { %2780 = vrsqrt.f32 %v1023_v27  ;;  %v1673_v20 = vmax.f32 %v1625_v36, 1e-24  ;;  %vm1172_vm14 = vmor %vm1170_vm13, %vm1171_vm12  ;;  %vm1180_vm4 = vweird.f32 %v1023_v27 }
 0x322   :  { %v1166_v34 = vmul.f32 %v2779_v48, %v1165_v15  ;;  %v1163_v12 = vsel %vm1162_vm11, %v2777_v63, %v1159_v13 }
 0x323   :  { %2782 = vrsqrt.f32 %v1673_v20  ;;  %2471 = vmatmul.msk.f32.gmra.mxu0 %vm515_vm7, %v1163_v12  ;;  %vm1695_vm8 = vweird.f32 %v1673_v20 }
 0x324   :  { %v1167_v61 = vmul.f32 0.5, %v1166_v34 }
 0x326   :  { %v1168_v45 = vsub.f32 1.5, %v1167_v61 }
 0x327   :  { %v2781_v16 = vpop.eup %2780 }
 0x328   :  { %v1175_v53 = vmul.f32 %v2781_v16, %v1023_v27  ;;  %v1628_v51 = vpop.f32.mrf.mxu1  ;;  %v1169_v0 = vmul.f32 %v2779_v48, %v1168_v45  ;;  %vm1181_vm1 = vweird.f32 %v2781_v16 }
 0x329   :  { %v2783_v35 = vpop.eup %2782  ;;  %v1674_v59 = vmax.f32 %v1628_v51, 1e-24  ;;  %vm1182_vm6 = vmor %vm1180_vm4, %vm1181_vm1 }
 0x32a   :  { %v1176_v41 = vmul.f32 %v2781_v16, %v1175_v53  ;;  %v1690_v37 = vmul.f32 %v2783_v35, %v1673_v20  ;;  %v1173_v36 = vsel %vm1172_vm14, %v2779_v48, %v1169_v0  ;;  %vm1696_vm5 = vweird.f32 %v2783_v35 }
 0x32b   :  { %2784 = vrsqrt.f32 %v1674_v59  ;;  %2472 = vmatmul.msk.f32.gmra.mxu0 %vm515_vm7, %v1173_v36  ;;  %vm1697_vm0 = vmor %vm1695_vm8, %vm1696_vm5  ;;  %vm1705_vm3 = vweird.f32 %v1674_v59 }
 0x32c   :  { %v1177_v63 = vmul.f32 0.5, %v1176_v41  ;;  %v1691_v15 = vmul.f32 %v2783_v35, %v1690_v37 }
 0x32e   :  { %v1178_v13 = vsub.f32 1.5, %v1177_v63  ;;  %v1692_v34 = vmul.f32 0.5, %v1691_v15 }
 0x330   :  { %v1693_v12 = vsub.f32 1.5, %v1692_v34  ;;  %v1631_v31 = vpop.f32.mrf.mxu1  ;;  %v1179_v61 = vmul.f32 %v2781_v16, %v1178_v13 }
 0x331   :  { %v2785_v45 = vpop.eup %2784  ;;  %v1675_v17 = vmax.f32 %v1631_v31, 1e-24 }
 0x332   :  { %v1694_v51 = vmul.f32 %v2783_v35, %v1693_v12  ;;  %v1700_v53 = vmul.f32 %v2785_v45, %v1674_v59  ;;  %v1183_v48 = vsel %vm1182_vm6, %v2781_v16, %v1179_v61  ;;  %vm1706_vm9 = vweird.f32 %v2785_v45 }
 0x333   :  { %2786 = vrsqrt.f32 %v1675_v17  ;;  %2473 = vmatmul.msk.f32.gmra.mxu0 %vm515_vm7, %v1183_v48  ;;  %vm1707_vm10 = vmor %vm1705_vm3, %vm1706_vm9  ;;  %vm1715_vm12 = vweird.f32 %v1675_v17 }
 0x334   :  { %v1698_v37 = vsel %vm1697_vm0, %v2783_v35, %v1694_v51  ;;  %v1701_v0 = vmul.f32 %v2785_v45, %v1700_v53 }
 0x335   :  { %2557 = vmatmul.msk.f32.vlgmr.msra.gmra.mxu2 %vm515_vm7, %v1698_v37 }
 0x336   :  { %v1702_v27 = vmul.f32 0.5, %v1701_v0 }
 0x338   :  { %v1703_v41 = vsub.f32 1.5, %v1702_v27  ;;  %v1249_v36 = vpop.f32.mrf.mxu0  ;;  %v1634_v63 = vpop.f32.mrf.mxu1 }
 0x339   :  { %v2787_v15 = vpop.eup %2786  ;;  %v3672_v13 = vmul.f32 %v1249_v36, %v3409_v38  ;;  %v1676_v20 = vmax.f32 %v1634_v63, 1e-24 }
 0x33a   :  { %v1710_v16 = vmul.f32 %v2787_v15, %v1675_v17  ;;  %v1704_v34 = vmul.f32 %v2785_v45, %v1703_v41  ;;  %vm1716_vm11 = vweird.f32 %v2787_v15 }
 0x33b   :  { %2474 = vst.msk [vmem:[%s4277_s5 + $0x80] sm:$0xff] %vm225_vm2, %v3672_v13  ;;  %v1330_v35 = vpack.c.bf16 %v3672_v13, %v3672_v13  ;;  %2788 = vrsqrt.f32 %v1676_v20  ;;  %vm1717_vm13 = vmor %vm1715_vm12, %vm1716_vm11  ;;  %vm1725_vm1 = vweird.f32 %v1676_v20 }
 0x33c   :  { %v1711_v12 = vmul.f32 %v2787_v15, %v1710_v16  ;;  %v1708_v31 = vsel %vm1707_vm10, %v2785_v45, %v1704_v34 }
 0x33d   :  { %2490 = vst.msk [vmem:[%s4278_s6 + $0x40] sm:$0xf] %vm681_vm15, %v1330_v35  ;;  %2558 = vmatmul.msk.f32.gmra.mxu2 %vm515_vm7, %v1708_v31 }
 0x33e   :  { %v1712_v38 = vmul.f32 0.5, %v1711_v12 }
 0x340   :  { %v1713_v59 = vsub.f32 1.5, %v1712_v38  ;;  %v1252_v61 = vpop.f32.mrf.mxu0  ;;  %v1637_v51 = vpop.f32.mrf.mxu1 }
 0x341   :  { %v2789_v53 = vpop.eup %2788  ;;  %v3687_v48 = vmul.f32 %v1252_v61, %v3424_v18  ;;  %v1677_v37 = vmax.f32 %v1637_v51, 1e-24 }
 0x342   :  { %v1720_v0 = vmul.f32 %v2789_v53, %v1676_v20  ;;  %v1714_v45 = vmul.f32 %v2787_v15, %v1713_v59  ;;  %vm1726_vm14 = vweird.f32 %v2789_v53 }
 0x343   :  { %2475 = vst.msk [vmem:[%s4277_s5 + $0x88] sm:$0xff] %vm225_vm2, %v3687_v48  ;;  %v1331_v27 = vpack.c.bf16 %v3687_v48, %v3687_v48  ;;  %2790 = vrsqrt.f32 %v1677_v37  ;;  %vm1727_vm4 = vmor %vm1725_vm1, %vm1726_vm14  ;;  %vm1735_vm6 = vweird.f32 %v1677_v37 }
 0x344   :  { %v1721_v41 = vmul.f32 %v2789_v53, %v1720_v0  ;;  %v1718_v36 = vsel %vm1717_vm13, %v2787_v15, %v1714_v45 }
 0x345   :  { %2491 = vst.msk [vmem:[%s4278_s6 + $0x44] sm:$0xf] %vm681_vm15, %v1331_v27  ;;  %2559 = vmatmul.msk.f32.gmra.mxu2 %vm515_vm7, %v1718_v36 }
 0x346   :  { %v1722_v17 = vmul.f32 0.5, %v1721_v41 }
 0x348   :  { %v1723_v18 = vsub.f32 1.5, %v1722_v17  ;;  %v1255_v63 = vpop.f32.mrf.mxu0  ;;  %v1640_v16 = vpop.f32.mrf.mxu1 }
 0x349   :  { %v2791_v34 = vpop.eup %2790  ;;  %v3702_v35 = vmul.f32 %v1255_v63, %v3437_v49  ;;  %v1678_v12 = vmax.f32 %v1640_v16, 1e-24 }
 0x34a   :  { %v1730_v31 = vmul.f32 %v2791_v34, %v1677_v37  ;;  %v1724_v15 = vmul.f32 %v2789_v53, %v1723_v18  ;;  %vm1736_vm5 = vweird.f32 %v2791_v34 }
 0x34b   :  { %2476 = vst.msk [vmem:[%s4277_s5 + $0x90] sm:$0xff] %vm225_vm2, %v3702_v35  ;;  %v1332_v38 = vpack.c.bf16 %v3702_v35, %v3702_v35  ;;  %2792 = vrsqrt.f32 %v1678_v12  ;;  %vm1737_vm8 = vmor %vm1735_vm6, %vm1736_vm5  ;;  %vm1745_vm9 = vweird.f32 %v1678_v12 }
 0x34c   :  { %v1731_v59 = vmul.f32 %v2791_v34, %v1730_v31  ;;  %v1728_v61 = vsel %vm1727_vm4, %v2789_v53, %v1724_v15 }
 0x34d   :  { %2492 = vst.msk [vmem:[%s4278_s6 + $0x48] sm:$0xf] %vm681_vm15, %v1332_v38  ;;  %2560 = vmatmul.msk.f32.gmra.mxu2 %vm515_vm7, %v1728_v61 }
 0x34e   :  { %v1732_v49 = vmul.f32 0.5, %v1731_v59 }
 0x350   :  { %v1733_v20 = vsub.f32 1.5, %v1732_v49  ;;  %v1258_v51 = vpop.f32.mrf.mxu0  ;;  %v1643_v0 = vpop.f32.mrf.mxu1 }
 0x351   :  { %v2793_v45 = vpop.eup %2792  ;;  %v3717_v27 = vmul.f32 %v1258_v51, %v3450_v55  ;;  %v1679_v41 = vmax.f32 %v1643_v0, 1e-24 }
 0x352   :  { %v1740_v36 = vmul.f32 %v2793_v45, %v1678_v12  ;;  %v1734_v53 = vmul.f32 %v2791_v34, %v1733_v20  ;;  %vm1746_vm0 = vweird.f32 %v2793_v45 }
 0x353   :  { %2477 = vst.msk [vmem:[%s4277_s5 + $0x98] sm:$0xff] %vm225_vm2, %v3717_v27  ;;  %v1333_v17 = vpack.c.bf16 %v3717_v27, %v3717_v27  ;;  %2794 = vrsqrt.f32 %v1679_v41  ;;  %vm1747_vm3 = vmor %vm1745_vm9, %vm1746_vm0  ;;  %vm1755_vm11 = vweird.f32 %v1679_v41 }
 0x354   :  { %v1741_v18 = vmul.f32 %v2793_v45, %v1740_v36  ;;  %v1738_v63 = vsel %vm1737_vm8, %v2791_v34, %v1734_v53 }
 0x355   :  { %2493 = vst.msk [vmem:[%s4278_s6 + $0x4c] sm:$0xf] %vm681_vm15, %v1333_v17  ;;  %2561 = vmatmul.msk.f32.gmra.mxu2 %vm515_vm7, %v1738_v63 }
 0x356   :  { %v1742_v55 = vmul.f32 0.5, %v1741_v18 }
 0x358   :  { %v1743_v37 = vsub.f32 1.5, %v1742_v55  ;;  %v1261_v16 = vpop.f32.mrf.mxu0  ;;  %v1646_v31 = vpop.f32.mrf.mxu1 }
 0x359   :  { %v2795_v15 = vpop.eup %2794  ;;  %v3732_v38 = vmul.f32 %v1261_v16, %v3463_v52  ;;  %v1680_v59 = vmax.f32 %v1646_v31, 1e-24 }
 0x35a   :  { %v1750_v61 = vmul.f32 %v2795_v15, %v1679_v41  ;;  %v1744_v34 = vmul.f32 %v2793_v45, %v1743_v37  ;;  %vm1756_vm10 = vweird.f32 %v2795_v15 }
 0x35b   :  { %2478 = vst.msk [vmem:[%s4277_s5 + $0xa0] sm:$0xff] %vm225_vm2, %v3732_v38  ;;  %v1334_v49 = vpack.c.bf16 %v3732_v38, %v3732_v38  ;;  %2796 = vrsqrt.f32 %v1680_v59  ;;  %vm1757_vm12 = vmor %vm1755_vm11, %vm1756_vm10  ;;  %vm1765_vm14 = vweird.f32 %v1680_v59 }
 0x35c   :  { %v1751_v20 = vmul.f32 %v2795_v15, %v1750_v61  ;;  %v1748_v51 = vsel %vm1747_vm3, %v2793_v45, %v1744_v34 }
 0x35d   :  { %2494 = vst.msk [vmem:[%s4278_s6 + $0x50] sm:$0xf] %vm681_vm15, %v1334_v49  ;;  %2562 = vmatmul.msk.f32.gmra.mxu2 %vm515_vm7, %v1748_v51 }
 0x35e   :  { %v1752_v52 = vmul.f32 0.5, %v1751_v20 }
 0x360   :  { %v1753_v12 = vsub.f32 1.5, %v1752_v52  ;;  %v1264_v0 = vpop.f32.mrf.mxu0  ;;  %v1649_v36 = vpop.f32.mrf.mxu1 }
 0x361   :  { %v2797_v53 = vpop.eup %2796  ;;  %v3747_v17 = vmul.f32 %v1264_v0, %v3476_v5  ;;  %v1681_v18 = vmax.f32 %v1649_v36, 1e-24 }
 0x362   :  { %v1760_v63 = vmul.f32 %v2797_v53, %v1680_v59  ;;  %v1754_v45 = vmul.f32 %v2795_v15, %v1753_v12  ;;  %vm1766_vm13 = vweird.f32 %v2797_v53 }
 0x363   :  { %2479 = vst.msk [vmem:[%s4277_s5 + $0xa8] sm:$0xff] %vm225_vm2, %v3747_v17  ;;  %v1335_v55 = vpack.c.bf16 %v3747_v17, %v3747_v17  ;;  %2798 = vrsqrt.f32 %v1681_v18  ;;  %vm1767_vm1 = vmor %vm1765_vm14, %vm1766_vm13  ;;  %vm1775_vm5 = vweird.f32 %v1681_v18 }
 0x364   :  { %v1761_v37 = vmul.f32 %v2797_v53, %v1760_v63  ;;  %v1758_v16 = vsel %vm1757_vm12, %v2795_v15, %v1754_v45 }
 0x365   :  { %2495 = vst.msk [vmem:[%s4278_s6 + $0x54] sm:$0xf] %vm681_vm15, %v1335_v55  ;;  %2563 = vmatmul.msk.f32.gmra.mxu2 %vm515_vm7, %v1758_v16 }
 0x366   :  { %v1762_v5 = vmul.f32 0.5, %v1761_v37 }
 0x368   :  { %v1763_v41 = vsub.f32 1.5, %v1762_v5  ;;  %v1267_v31 = vpop.f32.mrf.mxu0  ;;  %v1652_v61 = vpop.f32.mrf.mxu1 }
 0x369   :  { %v2799_v34 = vpop.eup %2798  ;;  %v3762_v49 = vmul.f32 %v1267_v31, %v3489_v11  ;;  %v1682_v20 = vmax.f32 %v1652_v61, 1e-24 }
 0x36a   :  { %v1770_v51 = vmul.f32 %v2799_v34, %v1681_v18  ;;  %v1764_v15 = vmul.f32 %v2797_v53, %v1763_v41  ;;  %vm1776_vm4 = vweird.f32 %v2799_v34 }
 0x36b   :  { %2480 = vst.msk [vmem:[%s4277_s5 + $0xb0] sm:$0xff] %vm225_vm2, %v3762_v49  ;;  %v1336_v52 = vpack.c.bf16 %v3762_v49, %v3762_v49  ;;  %2800 = vrsqrt.f32 %v1682_v20  ;;  %vm1777_vm6 = vmor %vm1775_vm5, %vm1776_vm4  ;;  %vm1785_vm0 = vweird.f32 %v1682_v20 }
 0x36c   :  { %v1771_v12 = vmul.f32 %v2799_v34, %v1770_v51  ;;  %v1768_v0 = vsel %vm1767_vm1, %v2797_v53, %v1764_v15 }
 0x36d   :  { %2496 = vst.msk [vmem:[%s4278_s6 + $0x58] sm:$0xf] %vm681_vm15, %v1336_v52  ;;  %2564 = vmatmul.msk.f32.gmra.mxu2 %vm515_vm7, %v1768_v0 }
 0x36e   :  { %v1772_v11 = vmul.f32 0.5, %v1771_v12 }
 0x370   :  { %v1773_v59 = vsub.f32 1.5, %v1772_v11  ;;  %v1270_v36 = vpop.f32.mrf.mxu0  ;;  %v1655_v63 = vpop.f32.mrf.mxu1 }
 0x371   :  { %v2801_v45 = vpop.eup %2800  ;;  %v3777_v55 = vmul.f32 %v1270_v36, %v3500_v23  ;;  %v1683_v37 = vmax.f32 %v1655_v63, 1e-24 }
 0x372   :  { %v1780_v16 = vmul.f32 %v2801_v45, %v1682_v20  ;;  %v1774_v53 = vmul.f32 %v2799_v34, %v1773_v59  ;;  %vm1786_vm8 = vweird.f32 %v2801_v45 }
 0x373   :  { %2481 = vst.msk [vmem:[%s4277_s5 + $0xb8] sm:$0xff] %vm225_vm2, %v3777_v55  ;;  %v1337_v5 = vpack.c.bf16 %v3777_v55, %v3777_v55  ;;  %2802 = vrsqrt.f32 %v1683_v37  ;;  %vm1787_vm9 = vmor %vm1785_vm0, %vm1786_vm8  ;;  %vm1795_vm10 = vweird.f32 %v1683_v37 }
 0x374   :  { %v1781_v41 = vmul.f32 %v2801_v45, %v1780_v16  ;;  %v1778_v31 = vsel %vm1777_vm6, %v2799_v34, %v1774_v53 }
 0x375   :  { %2497 = vst.msk [vmem:[%s4278_s6 + $0x5c] sm:$0xf] %vm681_vm15, %v1337_v5  ;;  %2565 = vmatmul.msk.f32.gmra.mxu2 %vm515_vm7, %v1778_v31 }
 0x376   :  { %v1782_v23 = vmul.f32 0.5, %v1781_v41 }
 0x378   :  { %v1783_v18 = vsub.f32 1.5, %v1782_v23  ;;  %v1273_v61 = vpop.f32.mrf.mxu0  ;;  %v1658_v51 = vpop.f32.mrf.mxu1 }
 0x379   :  { %v2803_v15 = vpop.eup %2802  ;;  %v3792_v52 = vmul.f32 %v1273_v61, %v3509_v30  ;;  %v1684_v12 = vmax.f32 %v1658_v51, 1e-24 }
 0x37a   :  { %v1790_v0 = vmul.f32 %v2803_v15, %v1683_v37  ;;  %v1784_v34 = vmul.f32 %v2801_v45, %v1783_v18  ;;  %vm1796_vm3 = vweird.f32 %v2803_v15 }
 0x37b   :  { %2482 = vst.msk [vmem:[%s4277_s5 + $0xc0] sm:$0xff] %vm225_vm2, %v3792_v52  ;;  %v1338_v11 = vpack.c.bf16 %v3792_v52, %v3792_v52  ;;  %2804 = vrsqrt.f32 %v1684_v12  ;;  %vm1797_vm11 = vmor %vm1795_vm10, %vm1796_vm3  ;;  %vm1805_vm13 = vweird.f32 %v1684_v12 }
 0x37c   :  { %v1791_v59 = vmul.f32 %v2803_v15, %v1790_v0  ;;  %v1788_v36 = vsel %vm1787_vm9, %v2801_v45, %v1784_v34 }
 0x37d   :  { %2498 = vst.msk [vmem:[%s4278_s6 + $0x60] sm:$0xf] %vm681_vm15, %v1338_v11  ;;  %2566 = vmatmul.msk.f32.gmra.mxu2 %vm515_vm7, %v1788_v36 }
 0x37e   :  { %v1792_v30 = vmul.f32 0.5, %v1791_v59 }
 0x380   :  { %v1793_v20 = vsub.f32 1.5, %v1792_v30  ;;  %v1276_v63 = vpop.f32.mrf.mxu0  ;;  %v1661_v16 = vpop.f32.mrf.mxu1 }
 0x381   :  { %v2805_v53 = vpop.eup %2804  ;;  %v3807_v5 = vmul.f32 %v1276_v63, %v3518_v26  ;;  %v1685_v41 = vmax.f32 %v1661_v16, 1e-24 }
 0x382   :  { %v1800_v31 = vmul.f32 %v2805_v53, %v1684_v12  ;;  %v1794_v45 = vmul.f32 %v2803_v15, %v1793_v20  ;;  %vm1806_vm12 = vweird.f32 %v2805_v53 }
 0x383   :  { %2483 = vst.msk [vmem:[%s4277_s5 + $0xc8] sm:$0xff] %vm225_vm2, %v3807_v5  ;;  %v1339_v23 = vpack.c.bf16 %v3807_v5, %v3807_v5  ;;  %2806 = vrsqrt.f32 %v1685_v41  ;;  %vm1807_vm14 = vmor %vm1805_vm13, %vm1806_vm12  ;;  %vm1815_vm4 = vweird.f32 %v1685_v41 }
 0x384   :  { %v1801_v18 = vmul.f32 %v2805_v53, %v1800_v31  ;;  %v1798_v61 = vsel %vm1797_vm11, %v2803_v15, %v1794_v45 }
 0x385   :  { %2499 = vst.msk [vmem:[%s4278_s6 + $0x64] sm:$0xf] %vm681_vm15, %v1339_v23  ;;  %2567 = vmatmul.msk.f32.gmra.mxu2 %vm515_vm7, %v1798_v61 }
 0x386   :  { %v1802_v26 = vmul.f32 0.5, %v1801_v18 }
 0x388   :  { %v1803_v37 = vsub.f32 1.5, %v1802_v26  ;;  %v1279_v51 = vpop.f32.mrf.mxu0  ;;  %v1664_v0 = vpop.f32.mrf.mxu1 }
 0x389   :  { %v2807_v34 = vpop.eup %2806  ;;  %v3822_v11 = vmul.f32 %v1279_v51, %v3527_v32  ;;  %v1686_v59 = vmax.f32 %v1664_v0, 1e-24 }
 0x38a   :  { %v1810_v36 = vmul.f32 %v2807_v34, %v1685_v41  ;;  %v1804_v15 = vmul.f32 %v2805_v53, %v1803_v37  ;;  %vm1816_vm1 = vweird.f32 %v2807_v34 }
 0x38b   :  { %2484 = vst.msk [vmem:[%s4277_s5 + $0xd0] sm:$0xff] %vm225_vm2, %v3822_v11  ;;  %v1340_v30 = vpack.c.bf16 %v3822_v11, %v3822_v11  ;;  %2808 = vrsqrt.f32 %v1686_v59  ;;  %vm1817_vm5 = vmor %vm1815_vm4, %vm1816_vm1  ;;  %vm1825_vm8 = vweird.f32 %v1686_v59 }
 0x38c   :  { %v1811_v20 = vmul.f32 %v2807_v34, %v1810_v36  ;;  %v1808_v63 = vsel %vm1807_vm14, %v2805_v53, %v1804_v15 }
 0x38d   :  { %2500 = vst.msk [vmem:[%s4278_s6 + $0x68] sm:$0xf] %vm681_vm15, %v1340_v30  ;;  %2568 = vmatmul.msk.f32.gmra.mxu2 %vm515_vm7, %v1808_v63 }
 0x38e   :  { %v1812_v32 = vmul.f32 0.5, %v1811_v20 }
 0x390   :  { %v1813_v12 = vsub.f32 1.5, %v1812_v32  ;;  %v1282_v16 = vpop.f32.mrf.mxu0  ;;  %v1667_v31 = vpop.f32.mrf.mxu1 }
 0x391   :  { %v2809_v45 = vpop.eup %2808  ;;  %v3837_v23 = vmul.f32 %v1282_v16, %v3536_v47  ;;  %v1687_v18 = vmax.f32 %v1667_v31, 1e-24 }
 0x392   :  { %v1820_v61 = vmul.f32 %v2809_v45, %v1686_v59  ;;  %v1814_v53 = vmul.f32 %v2807_v34, %v1813_v12  ;;  %vm1826_vm6 = vweird.f32 %v2809_v45 }
 0x393   :  { %2485 = vst.msk [vmem:[%s4277_s5 + $0xd8] sm:$0xff] %vm225_vm2, %v3837_v23  ;;  %v1341_v26 = vpack.c.bf16 %v3837_v23, %v3837_v23  ;;  %2810 = vrsqrt.f32 %v1687_v18  ;;  %vm1827_vm0 = vmor %vm1825_vm8, %vm1826_vm6  ;;  %vm1835_vm3 = vweird.f32 %v1687_v18 }
 0x394   :  { %v1821_v37 = vmul.f32 %v2809_v45, %v1820_v61  ;;  %v1818_v51 = vsel %vm1817_vm5, %v2807_v34, %v1814_v53 }
 0x395   :  { %2501 = vst.msk [vmem:[%s4278_s6 + $0x6c] sm:$0xf] %vm681_vm15, %v1341_v26  ;;  %2569 = vmatmul.msk.f32.gmra.mxu2 %vm515_vm7, %v1818_v51 }
 0x396   :  { %v1822_v47 = vmul.f32 0.5, %v1821_v37 }
 0x398   :  { %v1823_v41 = vsub.f32 1.5, %v1822_v47  ;;  %v1285_v0 = vpop.f32.mrf.mxu0  ;;  %v1670_v36 = vpop.f32.mrf.mxu1 }
 0x399   :  { %v2811_v15 = vpop.eup %2810  ;;  %v3852_v30 = vmul.f32 %v1285_v0, %v3545_v57  ;;  %v1688_v20 = vmax.f32 %v1670_v36, 1e-24 }
 0x39a   :  { %v1830_v63 = vmul.f32 %v2811_v15, %v1687_v18  ;;  %v1824_v34 = vmul.f32 %v2809_v45, %v1823_v41  ;;  %vm1836_vm9 = vweird.f32 %v2811_v15 }
 0x39b   :  { %2486 = vst.msk [vmem:[%s4277_s5 + $0xe0] sm:$0xff] %vm225_vm2, %v3852_v30  ;;  %v1342_v32 = vpack.c.bf16 %v3852_v30, %v3852_v30  ;;  %2812 = vrsqrt.f32 %v1688_v20  ;;  %vm1837_vm10 = vmor %vm1835_vm3, %vm1836_vm9  ;;  %vm1845_vm12 = vweird.f32 %v1688_v20 }
 0x39c   :  { %v1831_v12 = vmul.f32 %v2811_v15, %v1830_v63  ;;  %v1828_v16 = vsel %vm1827_vm0, %v2809_v45, %v1824_v34 }
 0x39d   :  { %2502 = vst.msk [vmem:[%s4278_s6 + $0x70] sm:$0xf] %vm681_vm15, %v1342_v32  ;;  %2570 = vmatmul.msk.f32.gmra.mxu2 %vm515_vm7, %v1828_v16 }
 0x39e   :  { %v1832_v57 = vmul.f32 0.5, %v1831_v12 }
 0x3a0   :  { %v1833_v59 = vsub.f32 1.5, %v1832_v57  ;;  %v1288_v31 = vpop.f32.mrf.mxu0 }
 0x3a1   :  { %v2813_v61 = vpop.eup %2812  ;;  %v3867_v53 = vmul.f32 %v1288_v31, %v3554_v1 }
 0x3a2   :  { %v1840_v26 = vmul.f32 %v2813_v61, %v1688_v20  ;;  %v1834_v37 = vmul.f32 %v2811_v15, %v1833_v59  ;;  %vm1846_vm11 = vweird.f32 %v2813_v61 }
 0x3a3   :  { %2487 = vst.msk [vmem:[%s4277_s5 + $0xe8] sm:$0xff] %vm225_vm2, %v3867_v53  ;;  %v1343_v45 = vpack.c.bf16 %v3867_v53, %v3867_v53  ;;  %vm1847_vm13 = vmor %vm1845_vm12, %vm1846_vm11 }
 0x3a4   :  { %v1841_v51 = vmul.f32 %v2813_v61, %v1840_v26  ;;  %v1838_v47 = vsel %vm1837_vm10, %v2811_v15, %v1834_v37 }
 0x3a5   :  { %2503 = vst.msk [vmem:[%s4278_s6 + $0x74] sm:$0xf] %vm681_vm15, %v1343_v45  ;;  %2571 = vmatmul.msk.f32.gmra.mxu2 %vm515_vm7, %v1838_v47 }
 0x3a6   :  { %v1842_v1 = vmul.f32 0.5, %v1841_v51 }
 0x3a8   :  { %v1843_v18 = vsub.f32 1.5, %v1842_v1  ;;  %v1291_v41 = vpop.f32.mrf.mxu0 }
 0x3a9   :  { %v3882_v0 = vmul.f32 %v1291_v41, %v3563_v9 }
 0x3aa   :  { %v1844_v36 = vmul.f32 %v2813_v61, %v1843_v18 }
 0x3ab   :  { %2488 = vst.msk [vmem:[%s4277_s5 + $0xf0] sm:$0xff] %vm225_vm2, %v3882_v0  ;;  %v1344_v15 = vpack.c.bf16 %v3882_v0, %v3882_v0 }
 0x3ac   :  { %v1848_v63 = vsel %vm1847_vm13, %v2813_v61, %v1844_v36 }
 0x3ad   :  { %2504 = vst.msk [vmem:[%s4278_s6 + $0x78] sm:$0xf] %vm681_vm15, %v1344_v15  ;;  %2572 = vmatmul.msk.f32.gmra.mxu2 %vm515_vm7, %v1848_v63  ;;  %v4290_v63 = vld [vmem:[#allocation7_spill] sm:$0xff] }
 0x3b0   :  { %v1294_v9 = vpop.f32.mrf.mxu0 }
 0x3b1   :  { %v3897_v20 = vmul.f32 %v1294_v9, %v3569_v4  ;;  %v4291_v9 = vld [vmem:[#allocation6_spill] sm:$0xff] }
 0x3b3   :  { %2489 = vst.msk [vmem:[%s4277_s5 + $0xf8] sm:$0xff] %vm225_vm2, %v3897_v20  ;;  %v1345_v34 = vpack.c.bf16 %v3897_v20, %v3897_v20  ;;  %2605 = vmatpush.xpose.msk.msrb.mxu0 %vm225_vm2, %v3897_v20 }
 0x3b5   :  { %2505 = vst.msk [vmem:[%s4278_s6 + $0x7c] sm:$0xf] %vm681_vm15, %v1345_v34 }
 0x3b7   :  { %2606 = vmatpush.xpose.msk.msrb.mxu0 %vm225_vm2, %v3882_v0 }
 0x3b8   :  { %v1914_v4 = vpop.f32.mrf.mxu2 }
 0x3b9   :  { %v3915_v32 = vmul.f32 %v1914_v4, %v3574_v14  ;;  %v4293_v4 = vld [vmem:[#allocation5_spill] sm:$0xff] }
 0x3bb   :  { %2573 = vst.msk [vmem:[%s4277_s5 + $0x100] sm:$0xff] %vm225_vm2, %v3915_v32  ;;  %v1995_v12 = vpack.c.bf16 %v3915_v32, %v3915_v32  ;;  %2607 = vmatpush.xpose.msk.msrb.mxu0 %vm225_vm2, %v3867_v53 }
 0x3bd   :  { %2589 = vst.msk [vmem:[%s4278_s6 + $0x80] sm:$0xf] %vm681_vm15, %v1995_v12 }
 0x3bf   :  { %2608 = vmatpush.xpose.msk.msrb.mxu0 %vm225_vm2, %v3852_v30 }
 0x3c0   :  { %v1917_v14 = vpop.f32.mrf.mxu2 }
 0x3c1   :  { %v3933_v16 = vmul.f32 %v1917_v14, %v3579_v24  ;;  %v4294_v14 = vld [vmem:[#allocation9_spill] sm:$0xff] }
 0x3c3   :  { %2574 = vst.msk [vmem:[%s4277_s5 + $0x108] sm:$0xff] %vm225_vm2, %v3933_v16  ;;  %v1996_v57 = vpack.c.bf16 %v3933_v16, %v3933_v16  ;;  %2609 = vmatpush.xpose.msk.msrb.mxu0 %vm225_vm2, %v3837_v23 }
 0x3c5   :  { %2590 = vst.msk [vmem:[%s4278_s6 + $0x84] sm:$0xf] %vm681_vm15, %v1996_v57 }
 0x3c7   :  { %2610 = vmatpush.xpose.msk.msrb.mxu0 %vm225_vm2, %v3822_v11 }
 0x3c8   :  { %v1920_v24 = vpop.f32.mrf.mxu2 }
 0x3c9   :  { %v3951_v59 = vmul.f32 %v1920_v24, %v3584_v40 }
 0x3cb   :  { %2575 = vst.msk [vmem:[%s4277_s5 + $0x110] sm:$0xff] %vm225_vm2, %v3951_v59  ;;  %v1997_v31 = vpack.c.bf16 %v3951_v59, %v3951_v59  ;;  %2611 = vmatpush.xpose.msk.msrb.mxu0 %vm225_vm2, %v3807_v5 }
 0x3cd   :  { %2591 = vst.msk [vmem:[%s4278_s6 + $0x88] sm:$0xf] %vm681_vm15, %v1997_v31 }
 0x3cf   :  { %2612 = vmatpush.xpose.msk.msrb.mxu0 %vm225_vm2, %v3792_v52 }
 0x3d0   :  { %v1923_v40 = vpop.f32.mrf.mxu2 }
 0x3d1   :  { %v3969_v61 = vmul.f32 %v1923_v40, %v3589_v7 }
 0x3d3   :  { %2576 = vst.msk [vmem:[%s4277_s5 + $0x118] sm:$0xff] %vm225_vm2, %v3969_v61  ;;  %v1998_v26 = vpack.c.bf16 %v3969_v61, %v3969_v61  ;;  %2613 = vmatpush.xpose.msk.msrb.mxu0 %vm225_vm2, %v3777_v55 }
 0x3d5   :  { %2592 = vst.msk [vmem:[%s4278_s6 + $0x8c] sm:$0xf] %vm681_vm15, %v1998_v26 }
 0x3d7   :  { %2614 = vmatpush.xpose.msk.msrb.mxu0 %vm225_vm2, %v3762_v49 }
 0x3d8   :  { %v1926_v7 = vpop.f32.mrf.mxu2 }
 0x3d9   :  { %v3987_v37 = vmul.f32 %v1926_v7, %v3595_v28 }
 0x3db   :  { %2577 = vst.msk [vmem:[%s4277_s5 + $0x120] sm:$0xff] %vm225_vm2, %v3987_v37  ;;  %v1999_v45 = vpack.c.bf16 %v3987_v37, %v3987_v37  ;;  %2615 = vmatpush.xpose.msk.msrb.mxu0 %vm225_vm2, %v3747_v17 }
 0x3dd   :  { %2593 = vst.msk [vmem:[%s4278_s6 + $0x90] sm:$0xf] %vm681_vm15, %v1999_v45 }
 0x3df   :  { %2616 = vmatpush.xpose.msk.msrb.mxu0 %vm225_vm2, %v3732_v38 }
 0x3e0   :  { %v1929_v28 = vpop.f32.mrf.mxu2 }
 0x3e1   :  { %v4005_v51 = vmul.f32 %v1929_v28, %v3601_v60 }
 0x3e3   :  { %2578 = vst.msk [vmem:[%s4277_s5 + $0x128] sm:$0xff] %vm225_vm2, %v4005_v51  ;;  %v2000_v47 = vpack.c.bf16 %v4005_v51, %v4005_v51  ;;  %2617 = vmatpush.xpose.msk.msrb.mxu0 %vm225_vm2, %v3717_v27 }
 0x3e5   :  { %2594 = vst.msk [vmem:[%s4278_s6 + $0x94] sm:$0xf] %vm681_vm15, %v2000_v47 }
 0x3e7   :  { %2618 = vmatpush.xpose.msk.msrb.mxu0 %vm225_vm2, %v3702_v35 }
 0x3e8   :  { %v1932_v60 = vpop.f32.mrf.mxu2 }
 0x3e9   :  { %v4023_v1 = vmul.f32 %v1932_v60, %v3607_v39 }
 0x3eb   :  { %2579 = vst.msk [vmem:[%s4277_s5 + $0x130] sm:$0xff] %vm225_vm2, %v4023_v1  ;;  %v2001_v18 = vpack.c.bf16 %v4023_v1, %v4023_v1  ;;  %2619 = vmatpush.xpose.msk.msrb.mxu0 %vm225_vm2, %v3687_v48 }
 0x3ed   :  { %2595 = vst.msk [vmem:[%s4278_s6 + $0x98] sm:$0xf] %vm681_vm15, %v2001_v18 }
 0x3ef   :  { %2620 = vmatpush.xpose.msk.msrb.mxu0 %vm225_vm2, %v3672_v13 }
 0x3f0   :  { %v1935_v39 = vpop.f32.mrf.mxu2 }
 0x3f1   :  { %v4043_v41 = vmul.f32 %v1935_v39, %v3613_v56 }
 0x3f3   :  { %2659 = vmatpush.xpose.msk.msra.mxu0 %vm225_vm2, %v3385_v33  ;;  %2580 = vst.msk [vmem:[%s4277_s5 + $0x138] sm:$0xff] %vm225_vm2, %v4043_v41  ;;  %v2002_v36 = vpack.c.bf16 %v4043_v41, %v4043_v41 }
 0x3f5   :  { %2596 = vst.msk [vmem:[%s4278_s6 + $0x9c] sm:$0xf] %vm681_vm15, %v2002_v36 }
 0x3f7   :  { %2660 = vmatpush.xpose.msk.msra.mxu0 %vm225_vm2, %v3367_v29 }
 0x3f8   :  { %v1938_v33 = vpop.f32.mrf.mxu2 }
 0x3f9   :  { %v4061_v56 = vmul.f32 %v1938_v33, %v3619_v43 }
 0x3fb   :  { %2661 = vmatpush.xpose.msk.msra.mxu0 %vm225_vm2, %v3349_v25  ;;  %2581 = vst.msk [vmem:[%s4277_s5 + $0x140] sm:$0xff] %vm225_vm2, %v4061_v56  ;;  %v2003_v29 = vpack.c.bf16 %v4061_v56, %v4061_v56 }
 0x3fd   :  { %2597 = vst.msk [vmem:[%s4278_s6 + $0xa0] sm:$0xf] %vm681_vm15, %v2003_v29 }
 0x3ff   :  { %2662 = vmatpush.xpose.msk.msra.mxu0 %vm225_vm2, %v3331_v19 }
 0x400   :  { %v1941_v25 = vpop.f32.mrf.mxu2 }
 0x401   :  { %v1971_v43 = vmul.f32 %v1941_v25, %v3625_v21 }
 0x403   :  { %2663 = vmatpush.xpose.msk.msra.mxu0 %vm225_vm2, %v3310_v10  ;;  %2582 = vst.msk [vmem:[%s4277_s5 + $0x148] sm:$0xff] %vm225_vm2, %v1971_v43  ;;  %v2004_v15 = vpack.c.bf16 %v1971_v43, %v1971_v43 }
 0x405   :  { %2598 = vst.msk [vmem:[%s4278_s6 + $0xa4] sm:$0xf] %vm681_vm15, %v2004_v15 }
 0x407   :  { %2664 = vmatpush.xpose.msk.msra.mxu0 %vm225_vm2, %v3292_v6 }
 0x408   :  { %v1944_v19 = vpop.f32.mrf.mxu2 }
 0x409   :  { %v1972_v10 = vmul.f32 %v1944_v19, %v3631_v44 }
 0x40b   :  { %2665 = vmatpush.xpose.msk.msra.mxu0 %vm225_vm2, %v3274_v2  ;;  %2583 = vst.msk [vmem:[%s4277_s5 + $0x150] sm:$0xff] %vm225_vm2, %v1972_v10  ;;  %v2005_v21 = vpack.c.bf16 %v1972_v10, %v1972_v10 }
 0x40d   :  { %2599 = vst.msk [vmem:[%s4278_s6 + $0xa8] sm:$0xf] %vm681_vm15, %v2005_v21 }
 0x40f   :  { %2666 = vmatpush.xpose.msk.msra.mxu0 %vm225_vm2, %v3256_v62 }
 0x410   :  { %v1947_v6 = vpop.f32.mrf.mxu2 }
 0x411   :  { %v1973_v2 = vmul.f32 %v1947_v6, %v3637_v22 }
 0x413   :  { %2667 = vmatpush.xpose.msk.msra.mxu0 %vm225_vm2, %v3238_v58  ;;  %2584 = vst.msk [vmem:[%s4277_s5 + $0x158] sm:$0xff] %vm225_vm2, %v1973_v2  ;;  %v2006_v44 = vpack.c.bf16 %v1973_v2, %v1973_v2 }
 0x415   :  { %2600 = vst.msk [vmem:[%s4278_s6 + $0xac] sm:$0xf] %vm681_vm15, %v2006_v44 }
 0x417   :  { %2668 = vmatpush.xpose.msk.msra.mxu0 %vm225_vm2, %v3220_v54 }
 0x418   :  { %v1950_v62 = vpop.f32.mrf.mxu2 }
 0x419   :  { %v1974_v58 = vmul.f32 %v1950_v62, %v3643_v8 }
 0x41b   :  { %2669 = vmatpush.xpose.msk.msra.mxu0 %vm225_vm2, %v3202_v50  ;;  %2585 = vst.msk [vmem:[%s4277_s5 + $0x160] sm:$0xff] %vm225_vm2, %v1974_v58  ;;  %v2007_v22 = vpack.c.bf16 %v1974_v58, %v1974_v58 }
 0x41d   :  { %2601 = vst.msk [vmem:[%s4278_s6 + $0xb0] sm:$0xf] %vm681_vm15, %v2007_v22 }
 0x41f   :  { %2670 = vmatpush.xpose.msk.msra.mxu0 %vm225_vm2, %v3184_v46 }
 0x420   :  { %v1953_v54 = vpop.f32.mrf.mxu2 }
 0x421   :  { %v1975_v50 = vmul.f32 %v1953_v54, %v3649_v3 }
 0x423   :  { %2671 = vmatpush.xpose.msk.msra.mxu0 %vm225_vm2, %v3163_v42  ;;  %2586 = vst.msk [vmem:[%s4277_s5 + $0x168] sm:$0xff] %vm225_vm2, %v1975_v50  ;;  %v2008_v8 = vpack.c.bf16 %v1975_v50, %v1975_v50  ;;  %v4292_v42 = vld [vmem:[#allocation8_spill] sm:$0xff] }
 0x425   :  { %2602 = vst.msk [vmem:[%s4278_s6 + $0xb4] sm:$0xf] %vm681_vm15, %v2008_v8 }
 0x427   :  { %2672 = vmatpush.xpose.msk.msra.mxu0 %vm225_vm2, %v4290_v63 }
 0x428   :  { %v1956_v46 = vpop.f32.mrf.mxu2 }
 0x429   :  { %v1976_v3 = vmul.f32 %v1956_v46, %v4292_v42 }
 0x42b   :  { %2673 = vmatpush.xpose.msk.msra.mxu0 %vm225_vm2, %v4291_v9  ;;  %2587 = vst.msk [vmem:[%s4277_s5 + $0x170] sm:$0xff] %vm225_vm2, %v1976_v3  ;;  %v2009_v34 = vpack.c.bf16 %v1976_v3, %v1976_v3 }
 0x42d   :  { %2603 = vst.msk [vmem:[%s4278_s6 + $0xb8] sm:$0xf] %vm681_vm15, %v2009_v34 }
 0x42f   :  { %2674 = vmatpush.xpose.msk.msra.mxu0 %vm225_vm2, %v4293_v4 }
 0x430   :  { %v1959_v12 = vpop.f32.mrf.mxu2 }
 0x431   :  { %v1977_v57 = vmul.f32 %v1959_v12, %v4294_v14 }
 0x433   :  { %2588 = vst.msk [vmem:[%s4277_s5 + $0x178] sm:$0xff] %vm225_vm2, %v1977_v57  ;;  %v2010_v24 = vpack.c.bf16 %v1977_v57, %v1977_v57  ;;  %2641 = vmatpush.xpose.msk.msrb.mxu1 %vm225_vm2, %v1977_v57  ;;  %2677 = vmatpush.xpose.msk.msra.mxu3 %vm225_vm2, %v1977_v57 }
 0x435   :  { %2604 = vst.msk [vmem:[%s4278_s6 + $0xbc] sm:$0xf] %vm681_vm15, %v2010_v24 }
 0x437   :  { %2642 = vmatpush.xpose.msk.msrb.mxu1 %vm225_vm2, %v1976_v3  ;;  %2678 = vmatpush.xpose.msk.msra.mxu3 %vm225_vm2, %v1976_v3 }
 0x43b   :  { %2643 = vmatpush.xpose.msk.msrb.mxu1 %vm225_vm2, %v1975_v50  ;;  %2679 = vmatpush.xpose.msk.msra.mxu3 %vm225_vm2, %v1975_v50 }
 0x43f   :  { %2644 = vmatpush.xpose.msk.msrb.mxu1 %vm225_vm2, %v1974_v58  ;;  %2680 = vmatpush.xpose.msk.msra.mxu3 %vm225_vm2, %v1974_v58 }
 0x443   :  { %2645 = vmatpush.xpose.msk.msrb.mxu1 %vm225_vm2, %v1973_v2  ;;  %2681 = vmatpush.xpose.msk.msra.mxu3 %vm225_vm2, %v1973_v2 }
 0x447   :  { %2646 = vmatpush.xpose.msk.msrb.mxu1 %vm225_vm2, %v1972_v10  ;;  %2682 = vmatpush.xpose.msk.msra.mxu3 %vm225_vm2, %v1972_v10 }
 0x44b   :  { %2647 = vmatpush.xpose.msk.msrb.mxu1 %vm225_vm2, %v1971_v43  ;;  %2683 = vmatpush.xpose.msk.msra.mxu3 %vm225_vm2, %v1971_v43 }
 0x44f   :  { %2648 = vmatpush.xpose.msk.msrb.mxu1 %vm225_vm2, %v4061_v56  ;;  %2684 = vmatpush.xpose.msk.msra.mxu3 %vm225_vm2, %v4061_v56 }
 0x453   :  { %2649 = vmatpush.xpose.msk.msrb.mxu1 %vm225_vm2, %v4043_v41  ;;  %2685 = vmatpush.xpose.msk.msra.mxu3 %vm225_vm2, %v4043_v41 }
 0x457   :  { %2650 = vmatpush.xpose.msk.msrb.mxu1 %vm225_vm2, %v4023_v1  ;;  %2686 = vmatpush.xpose.msk.msra.mxu3 %vm225_vm2, %v4023_v1 }
 0x45b   :  { %2651 = vmatpush.xpose.msk.msrb.mxu1 %vm225_vm2, %v4005_v51  ;;  %2687 = vmatpush.xpose.msk.msra.mxu3 %vm225_vm2, %v4005_v51 }
 0x45f   :  { %2652 = vmatpush.xpose.msk.msrb.mxu1 %vm225_vm2, %v3987_v37  ;;  %2688 = vmatpush.xpose.msk.msra.mxu3 %vm225_vm2, %v3987_v37 }
 0x463   :  { %2653 = vmatpush.xpose.msk.msrb.mxu1 %vm225_vm2, %v3969_v61  ;;  %2689 = vmatpush.xpose.msk.msra.mxu3 %vm225_vm2, %v3969_v61 }
 0x467   :  { %2654 = vmatpush.xpose.msk.msrb.mxu1 %vm225_vm2, %v3951_v59  ;;  %2690 = vmatpush.xpose.msk.msra.mxu3 %vm225_vm2, %v3951_v59 }
 0x46b   :  { %2655 = vmatpush.xpose.msk.msrb.mxu1 %vm225_vm2, %v3933_v16  ;;  %2691 = vmatpush.xpose.msk.msra.mxu3 %vm225_vm2, %v3933_v16  ;;  %v2622_v16 = vld [vmem:[%s4274_s2 + $0x4] sm:$0xf] }
 0x46c   :  { %2639 = vmatmul.msk.f32.vlgmr.msrb.gmra.mxu3 %vm225_vm2, %v2622_v16 }
 0x46f   :  { %2656 = vmatpush.xpose.msk.msrb.mxu1 %vm225_vm2, %v3915_v32  ;;  %2692 = vmatpush.xpose.msk.msra.mxu3 %vm225_vm2, %v3915_v32 }
 0x473   :  { %2695 = vmatpush.xpose.msk.msra.mxu1 %vm225_vm2, %v3897_v20 }
 0x477   :  { %2696 = vmatpush.xpose.msk.msra.mxu1 %vm225_vm2, %v3882_v0  ;;  %v2028_v0 = vld [vmem:[%s4274_s2] sm:$0xf] }
 0x478   :  { %2621 = vmatmul.msk.f32.vlgmr.msrb.gmra.mxu0 %vm225_vm2, %v2028_v0 }
 0x47b   :  { %2697 = vmatpush.xpose.msk.msra.mxu1 %vm225_vm2, %v3867_v53 }
 0x47f   :  { %2698 = vmatpush.xpose.msk.msra.mxu1 %vm225_vm2, %v3852_v30  ;;  %v2640_v30 = vld [vmem:[%s4274_s2 + $0x8] sm:$0xf] }
 0x480   :  { %2657 = vmatmul.msk.f32.vlgmr.msrb.gmra.mxu1 %vm225_vm2, %v2640_v30 }
 0x483   :  { %2699 = vmatpush.xpose.msk.msra.mxu1 %vm225_vm2, %v3837_v23  ;;  %v2676_v23 = vld [vmem:[%s4274_s2 + $0x10] sm:$0xf] }
 0x484   :  { %2693 = vmatmul.msk.f32.vlgmr.msra.gmra.mxu3 %vm225_vm2, %v2676_v23 }
 0x487   :  { %2700 = vmatpush.xpose.msk.msra.mxu1 %vm225_vm2, %v3822_v11  ;;  %v2658_v11 = vld [vmem:[%s4274_s2 + $0xc] sm:$0xf] }
 0x488   :  { %2675 = vmatmul.msk.f32.vlgmr.msra.gmra.mxu0 %vm225_vm2, %v2658_v11 }
 0x48b   :  { %2701 = vmatpush.xpose.msk.msra.mxu1 %vm225_vm2, %v3807_v5 }
 0x48f   :  { %2702 = vmatpush.xpose.msk.msra.mxu1 %vm225_vm2, %v3792_v52 }
 0x493   :  { %2703 = vmatpush.xpose.msk.msra.mxu1 %vm225_vm2, %v3777_v55 }
 0x497   :  { %2704 = vmatpush.xpose.msk.msra.mxu1 %vm225_vm2, %v3762_v49  ;;  %v2694_v49 = vld [vmem:[%s4274_s2 + $0x14] sm:$0xf]  ;;  %s2841_s2 = smov 64  }
 0x49b   :  { %2705 = vmatpush.xpose.msk.msra.mxu1 %vm225_vm2, %v3747_v17 }
 0x49f   :  { %2706 = vmatpush.xpose.msk.msra.mxu1 %vm225_vm2, %v3732_v38 }
 0x4a3   :  { %2707 = vmatpush.xpose.msk.msra.mxu1 %vm225_vm2, %v3717_v27 }
 0x4a7   :  { %2708 = vmatpush.xpose.msk.msra.mxu1 %vm225_vm2, %v3702_v35 }
 0x4ab   :  { %2709 = vmatpush.xpose.msk.msra.mxu1 %vm225_vm2, %v3687_v48 }
 0x4af   :  { %2710 = vmatpush.xpose.msk.msra.mxu1 %vm225_vm2, %v3672_v13 }
 0x4b2   :  { %2711 = vmatmul.msk.f32.vlgmr.msra.gmra.mxu1 %vm225_vm2, %v2694_v49 }
 0x4ef   :  { %v2171_v38 = vpop.f32.mrf.mxu3 }
 0x4f0   :  { %2175 = vst [vmem:[#allocation2 + $0x4] sm:$0xf] %v2171_v38 }
 0x4f5   :  { %v2097_v17 = vpop.f32.mrf.mxu0 }
 0x4f6   :  { %2100 = vst [vmem:[#allocation2] sm:$0xf] %v2097_v17 }
 0x4fd   :  { %v2246_v55 = vpop.f32.mrf.mxu1 }
 0x4fe   :  { %2250 = vst [vmem:[#allocation2 + $0x8] sm:$0xf] %v2246_v55 }
 0x505   :  { %v2273_v27 = vpop.f32.mrf.mxu0 }
 0x506   :  { %2277 = vst [vmem:[#allocation2 + $0xc] sm:$0xf] %v2273_v27 }
 0x507   :  { %v2300_v35 = vpop.f32.mrf.mxu3 }
 0x508   :  { %2304 = vst [vmem:[#allocation2 + $0x10] sm:$0xf] %v2300_v35 }
 0x52f   :  { %v2327_v13 = vpop.f32.mrf.mxu1 }
 0x530   :  { %2331 = vst [vmem:[#allocation2 + $0x14] sm:$0xf] %v2327_v13 }
 0x531   :  { %2348 = dma.vmem_to_hbm [thread:$0]  %s2341_s10, 384, %s2343_s13, [#allocation3], %s2841_s2, %s2841_s2, %s2842_s14  }
 0x532   :  { %2838 = dma.done.wait [#allocation3], 384  }
 0x533   :  { %2839 = vsyncadd [#allocation3], 4294966912 }
 0x534   :  { %2357 = vsyncpa [#allocation3], 1 }

</bundles_post_ra>
